<compile_context>
chip_gen: v6e
topology: v6e:2x2x1
jax: 0.10.0
libtpu: 0.0.40
codegen_flags: <defaults>
</compile_context>

<pallas_src>
import functools

import jax
import jax.numpy as jnp
from jax import lax
from jax.experimental import pallas as pl
from jax.experimental.pallas import tpu as pltpu

EPS = 1e-5  # nn.BatchNorm2d default


# ----------------------------- in-kernel helpers ---------------------------- #

def _masked_moments(z, m_valid):
    """Per-tile masked (sum, M2 around the tile mean) partials, lane-flattened.

    z: (rows, K) f32 for the current tile; rows beyond m_valid (global) are padding.
    Returns a (1, 1, 2K) f32 block: [sum | M2].
    """
    rows = z.shape[0]
    start = pl.program_id(0) * rows
    ridx = start + lax.broadcasted_iota(jnp.int32, (rows, 1), 0)
    mask = (ridx < m_valid).astype(jnp.float32)
    n = jnp.maximum(jnp.sum(mask, axis=0, keepdims=True), 1.0)      # (1, 1)
    s = jnp.sum(z * mask, axis=0, keepdims=True)                    # (1, K)
    mu = s / n
    d = (z - mu) * mask
    m2 = jnp.sum(d * d, axis=0, keepdims=True)                      # (1, K)
    return jnp.concatenate([s, m2], axis=1)[None]                   # (1, 1, 2K)


# ----------------------------- Pallas kernels ------------------------------- #

def conv_kernel(x_ref, w_ref, b_ref, y_ref, st_ref, *, m_valid):
    """3x3 conv for both branches (H taps in the lane axis, W taps in-kernel) +
    bias + per-tile BN1 moment partials.

    x_ref : (TH, W+2, 3*C) bf16   w_ref : (3, 3*C, C2) bf16   b_ref : (1, C2) f32
    y_ref : (TH*W, C2) bf16       st_ref: (1, 1, 2*C2) f32
    """
    th, wp2, _ = x_ref.shape
    w_out = wp2 - 2
    rows, c2 = y_ref.shape
    z = jnp.zeros((rows, c2), jnp.float32)
    for kw in range(3):                                   # static unroll: 3 MXU dots
        p = x_ref[:, kw:kw + w_out, :].reshape(rows, -1)  # (TH*W, 3C), bf16
        z = z + jnp.dot(p, w_ref[kw], preferred_element_type=jnp.float32)
    z = z + b_ref[...]
    y_ref[...] = z.astype(y_ref.dtype)
    # stats on the bf16-rounded values that downstream stages will actually see
    zr = y_ref[...].astype(jnp.float32)
    st_ref[...] = _masked_moments(zr, m_valid)


def deconv1_stats_kernel(y1_ref, sc1_ref, sh1_ref, w2_ref, b2_ref, st_ref, *, m_valid):
    """BN1 affine + ReLU, block-diagonal ConvTranspose2d(2,2) for both branches,
    emits only per-tile BN2 moment partials (no activation written back to HBM).

    y1_ref : (TR, C2) bf16   sc1/sh1 : (1, C2) f32
    w2_ref : (C2, 2G) bf16   b2_ref  : (1, 2G) f32   st_ref : (1, 1, 4G) f32
    """
    a1 = jnp.maximum(y1_ref[...].astype(jnp.float32) * sc1_ref[...] + sh1_ref[...], 0.0)
    z2 = jnp.dot(a1.astype(w2_ref.dtype), w2_ref[...],
                 preferred_element_type=jnp.float32) + b2_ref[...]
    st_ref[...] = _masked_moments(z2, m_valid)


def head_kernel(y1_ref, sc1_ref, sh1_ref, w2_ref, b2_ref,
                sc2_ref, sh2_ref, w3_ref, b3_ref, o_ref, *, k):
    """Recompute BN1+ReLU+deconv1 (cheap MXU work instead of a y2 HBM round trip),
    BN2 affine + ReLU, block-diagonal ConvTranspose2d(C4->1,2,2) for both branches,
    exact sigmoid and the DB step function, fully fused.

    y1_ref : (TR, C2) bf16   w2_ref : (C2, 2G) bf16   w3_ref : (2G, 32) bf16
    o_ref  : (TR, 48) f32 = [shrink16 | thresh16 | binary16], cols ordered (a,b,a',b')
    """
    a1 = jnp.maximum(y1_ref[...].astype(jnp.float32) * sc1_ref[...] + sh1_ref[...], 0.0)
    z2 = jnp.dot(a1.astype(w2_ref.dtype), w2_ref[...],
                 preferred_element_type=jnp.float32) + b2_ref[...]
    a2 = jnp.maximum(z2 * sc2_ref[...] + sh2_ref[...], 0.0)
    z3 = jnp.dot(a2.astype(w3_ref.dtype), w3_ref[...],
                 preferred_element_type=jnp.float32) + b3_ref[...]
    p = 1.0 / (1.0 + jnp.exp(-z3))                                  # exact sigmoid
    binary = 1.0 / (1.0 + jnp.exp(-k * (p[:, :16] - p[:, 16:])))    # DB step function
    o_ref[...] = jnp.concatenate([p, binary], axis=1)


# ------------------------------ tiling policy -------------------------------- #

def _row_tiling(R, W, target_pix=2048):
    """Pick TH (image rows per tile, multiple of 8) and the tile count RT = cdiv(R, TH).

    Targets ~1-2K pixel rows per tile (HBM-roofline sweet spot), keeps >=2 tiles when
    the image allows it, and makes a best-effort attempt at an even tile count so a
    v7x megacore can shard the "parallel" row grid across both TensorCores.
    """
    g = 8
    th = max(g, (target_pix // max(W, 1)) // g * g)
    half = (R // 2) // g * g
    if half >= g:
        th = min(th, half)
    rt = -(-R // th)
    if rt > 1 and rt % 2:
        for cand in range(th - g, max(g, th - 4 * g) - 1, -g):
            if -(-R // cand) % 2 == 0:
                th, rt = cand, -(-R // cand)
                break
    return th, rt


def _vmem_limit(tile_bytes):
    # double-buffered tiles + compiler temps; capped so the same code fits v7x (64 MiB).
    return int(min(max(3 * tile_bytes + (8 << 20), 16 << 20), 48 << 20))


# ------------------------------ JAX wrapper ---------------------------------- #

def dbhead_forward(x, params, *, k=50.0, training=True, target_rows=2048):
    N, C, H, W = x.shape
    C4 = C // 4
    C2 = 2 * C4            # fused branch channels after the 3x3 conv
    G = 4 * C4             # per-branch deconv1 columns, ordered (a, b, cout)
    R = N * H              # image rows
    M = N * H * W          # input pixels
    TH, RT = _row_tiling(R, W, target_rows)
    R_pad = RT * TH
    TRpix = TH * W
    M_pad = R_pad * W
    f32, bf16 = jnp.float32, jnp.bfloat16
    pb, pt = params['binarize'], params['thresh']

    # ---- input prep: H-direction im2col only (3x channels); W taps stay in-kernel ----
    x_nhwc = jnp.transpose(x, (0, 2, 3, 1)).astype(bf16)
    xp = jnp.pad(x_nhwc, ((0, 0), (1, 1), (1, 1), (0, 0)))                 # (N,H+2,W+2,C)
    xh = jnp.concatenate([xp[:, kh:kh + H] for kh in range(3)], axis=-1)   # (N,H,W+2,3C)
    xh = xh.reshape(R, W + 2, 3 * C)
    if R_pad > R:
        xh = jnp.pad(xh, ((0, R_pad - R), (0, 0), (0, 0)))

    # ---- fused parameters ----
    def conv_w_taps(p):   # (C4, C, 3, 3) -> (3, 3C, C4): [kw][(kh,cin), cout]
        return jnp.transpose(p['conv_w'], (3, 2, 1, 0)).reshape(3, 3 * C, C4)

    w1 = jnp.concatenate([conv_w_taps(pb), conv_w_taps(pt)], axis=-1).astype(bf16)
    b1 = jnp.concatenate([pb['conv_b'], pt['conv_b']]).reshape(1, C2).astype(f32)
    g1 = jnp.concatenate([pb['bn1_g'], pt['bn1_g']]).astype(f32)
    be1 = jnp.concatenate([pb['bn1_b'], pt['bn1_b']]).astype(f32)

    def dc1_w(p):         # (C4, C4, 2, 2) -> (C4, 4*C4), cols ordered (a, b, cout)
        return jnp.transpose(p['dc1_w'], (0, 2, 3, 1)).reshape(C4, G)

    w2 = jnp.zeros((C2, 2 * G), f32)          # block-diagonal over the two branches
    w2 = w2.at[:C4, :G].set(dc1_w(pb))
    w2 = w2.at[C4:, G:].set(dc1_w(pt))
    w2 = w2.astype(bf16)
    b2 = jnp.concatenate([jnp.tile(pb['dc1_b'], 4),
                          jnp.tile(pt['dc1_b'], 4)]).reshape(1, 2 * G).astype(f32)
    g2 = jnp.stack([pb['bn2_g'], pt['bn2_g']]).astype(f32)        # (2, C4)
    be2 = jnp.stack([pb['bn2_b'], pt['bn2_b']]).astype(f32)

    w3 = jnp.zeros((2 * G, 32), f32)          # block-diagonal over (branch, a, b) groups
    for gi in range(8):
        blk = (pb if gi < 4 else pt)['dc2_w'].reshape(C4, 4)      # cols = (a', b')
        w3 = w3.at[gi * C4:(gi + 1) * C4, gi * 4:(gi + 1) * 4].set(blk)
    w3 = w3.astype(bf16)
    b3 = jnp.concatenate([jnp.repeat(pb['dc2_b'], 16),
                          jnp.repeat(pt['dc2_b'], 16)]).reshape(1, 32).astype(f32)

    grid = (RT,)
    par = ("parallel",)

    # ---- stage 1: 3x3 conv (no 9x im2col) + per-tile BN1 moments ----
    t1 = (TH * (W + 2) * 3 * C + TRpix * C2) * 2 + 3 * 3 * C * C2 * 2 + 3 * C2 * 4
    y1, st1 = pl.pallas_call(
        functools.partial(conv_kernel, m_valid=M),
        grid=grid,
        in_specs=[pl.BlockSpec((TH, W + 2, 3 * C), lambda i: (i, 0, 0)),
                  pl.BlockSpec((3, 3 * C, C2), lambda i: (0, 0, 0)),
                  pl.BlockSpec((1, C2), lambda i: (0, 0))],
        out_specs=[pl.BlockSpec((TRpix, C2), lambda i: (i, 0)),
                   pl.BlockSpec((1, 1, 2 * C2), lambda i: (i, 0, 0))],
        out_shape=[jax.ShapeDtypeStruct((M_pad, C2), bf16),
                   jax.ShapeDtypeStruct((RT, 1, 2 * C2), f32)],
        compiler_params=pltpu.CompilerParams(dimension_semantics=par,
                                             vmem_limit_bytes=_vmem_limit(t1)),
    )(xh, w1, b1)

    # fold BN1 (training batch stats, biased variance) -> per-channel affine
    nt = jnp.clip(M - jnp.arange(RT) * TRpix, 1, TRpix).astype(f32)   # valid rows / tile
    s1, m21 = st1[:, 0, :C2], st1[:, 0, C2:]
    mean1 = jnp.sum(s1, 0) / M
    M2_1 = jnp.sum(m21, 0) + jnp.sum(nt[:, None] * (s1 / nt[:, None] - mean1) ** 2, 0)
    inv1 = lax.rsqrt(M2_1 / M + EPS)
    sc1 = (g1 * inv1).reshape(1, C2)
    sh1 = (be1 - mean1 * g1 * inv1).reshape(1, C2)

    # ---- stage 2: BN1 affine + ReLU + deconv1 -> per-tile BN2 moments only ----
    t2 = TRpix * C2 * 2 + C2 * 2 * G * 2 + (2 * C2 + 2 * G + 4 * G) * 4
    st2 = pl.pallas_call(
        functools.partial(deconv1_stats_kernel, m_valid=M),
        grid=grid,
        in_specs=[pl.BlockSpec((TRpix, C2), lambda i: (i, 0)),
                  pl.BlockSpec((1, C2), lambda i: (0, 0)),
                  pl.BlockSpec((1, C2), lambda i: (0, 0)),
                  pl.BlockSpec((C2, 2 * G), lambda i: (0, 0)),
                  pl.BlockSpec((1, 2 * G), lambda i: (0, 0))],
        out_specs=pl.BlockSpec((1, 1, 4 * G), lambda i: (i, 0, 0)),
        out_shape=jax.ShapeDtypeStruct((RT, 1, 4 * G), f32),
        compiler_params=pltpu.CompilerParams(dimension_semantics=par,
                                             vmem_limit_bytes=_vmem_limit(t2)),
    )(y1, sc1, sh1, w2, b2)

    # fold BN2: combine per-(tile, a, b) moment partials; count = 4*M (2x2 upsample)
    s2 = st2[:, 0, :2 * G].reshape(RT, 2, 4, C4)
    m22 = st2[:, 0, 2 * G:].reshape(RT, 2, 4, C4)
    cnt2 = 4.0 * M
    mean2 = jnp.sum(s2, (0, 2)) / cnt2                                # (2, C4)
    mu_p = s2 / nt[:, None, None, None]
    M2_2 = jnp.sum(m22, (0, 2)) + jnp.sum(
        nt[:, None, None, None] * (mu_p - mean2[None, :, None, :]) ** 2, (0, 2))
    inv2 = lax.rsqrt(M2_2 / cnt2 + EPS)
    sc2 = g2 * inv2
    sh2 = be2 - mean2 * sc2
    sc2c = jnp.broadcast_to(sc2[:, None, :], (2, 4, C4)).reshape(1, 2 * G)
    sh2c = jnp.broadcast_to(sh2[:, None, :], (2, 4, C4)).reshape(1, 2 * G)

    # ---- stage 3: re-read y1, recompute deconv1, BN2+ReLU, deconv2, sigmoid, step ----
    t3 = (TRpix * C2 + C2 * 2 * G + 2 * G * 32) * 2 + (2 * C2 + 4 * G + 32) * 4 \
        + TRpix * 48 * 4
    out_f = pl.pallas_call(
        functools.partial(head_kernel, k=float(k)),
        grid=grid,
        in_specs=[pl.BlockSpec((TRpix, C2), lambda i: (i, 0)),
                  pl.BlockSpec((1, C2), lambda i: (0, 0)),
                  pl.BlockSpec((1, C2), lambda i: (0, 0)),
                  pl.BlockSpec((C2, 2 * G), lambda i: (0, 0)),
                  pl.BlockSpec((1, 2 * G), lambda i: (0, 0)),
                  pl.BlockSpec((1, 2 * G), lambda i: (0, 0)),
                  pl.BlockSpec((1, 2 * G), lambda i: (0, 0)),
                  pl.BlockSpec((2 * G, 32), lambda i: (0, 0)),
                  pl.BlockSpec((1, 32), lambda i: (0, 0))],
        out_specs=pl.BlockSpec((TRpix, 48), lambda i: (i, 0)),
        out_shape=jax.ShapeDtypeStruct((M_pad, 48), f32),
        compiler_params=pltpu.CompilerParams(dimension_semantics=par,
                                             vmem_limit_bytes=_vmem_limit(t3)),
    )(y1, sc1, sh1, w2, b2, sc2c, sh2c, w3, b3)

    # ---- factored layout -> NCHW (pure XLA reshape/transpose glue) ----
    # out_f columns: (map in {shrink,thresh,binary}, a, b, a', b');
    # final pixel position is (4h + 2a + a', 4w + 2b + b').
    maps = out_f[:M].reshape(N, H, W, 3, 2, 2, 2, 2)
    maps = jnp.transpose(maps, (0, 3, 1, 4, 6, 2, 5, 7)).reshape(N, 3, 4 * H, 4 * W)
    return maps if training else maps[:, :2]


# --------------------------- parameter init ---------------------------------- #

def init_params(key, in_channels):
    C4 = in_channels // 4

    def kaiming(k_, shape, fan_in):
        return (jax.random.normal(k_, shape, jnp.float32)
                * jnp.sqrt(2.0 / fan_in)).astype(jnp.float32)

    def branch(ks, conv_bias):
        return {
            'conv_w': kaiming(ks[0], (C4, in_channels, 3, 3), in_channels * 9),
            'conv_b': (0.01 * jax.random.normal(ks[1], (C4,), jnp.float32)
                       if conv_bias else jnp.zeros((C4,), jnp.float32)),
            'bn1_g': jnp.ones((C4,), jnp.float32),
            'bn1_b': jnp.zeros((C4,), jnp.float32),
            'dc1_w': 0.1 * jax.random.normal(ks[2], (C4, C4, 2, 2), jnp.float32),
            'dc1_b': 0.01 * jax.random.normal(ks[3], (C4,), jnp.float32),
            'bn2_g': jnp.ones((C4,), jnp.float32),
            'bn2_b': jnp.zeros((C4,), jnp.float32),
            'dc2_w': 0.1 * jax.random.normal(ks[4], (C4, 1, 2, 2), jnp.float32),
            'dc2_b': 0.01 * jax.random.normal(ks[5], (1,), jnp.float32),
        }

    keys = jax.random.split(key, 12)
    return {
        'binarize': branch(keys[0:6], conv_bias=True),   # Conv2d default bias
        'thresh': branch(keys[6:12], conv_bias=False),   # Conv2d(..., bias=False)
    }


# --------------------------------- main --------------------------------------- #

if __name__ == "__main__":
    key = jax.random.PRNGKey(0)
    kx, kp = jax.random.split(key)

    N, C, H, W = 2, 16, 16, 16          # in_channels=16 -> inner channels 4
    x = jax.random.normal(kx, (N, C, H, W), jnp.float32)
    params = init_params(kp, C)

    # default tiling -> TH=16 image rows/tile, 2 tiles: exercises the pipelined grid
    y = dbhead_forward(x, params, k=50.0, training=True)
    y = jax.block_until_ready(y)

    assert y.shape == (N, 3, 4 * H, 4 * W), y.shape
    assert bool(jnp.all(jnp.isfinite(y)))
    print("KERNEL_OK")
</pallas_src>

<mosaic_0001>
module attributes {stable_mosaic.version = 11 : i64} {
  func.func @conv_kernel(%arg0: i32, %arg1: memref<16x18x48xbf16, #tpu.memory_space<vmem>>, %arg2: memref<3x48x8xbf16, #tpu.memory_space<vmem>>, %arg3: memref<1x8xf32, #tpu.memory_space<vmem>>, %arg4: memref<256x8xbf16, #tpu.memory_space<vmem>>, %arg5: memref<1x1x16xf32, #tpu.memory_space<vmem>>) attributes {dimension_semantics = [#tpu.dimension_semantics<parallel>], iteration_bounds = array<i64: 2>, scalar_prefetch = 0 : i64, scratch_operands = 0 : i64, tpu.core_type = #tpu.core_type<tc>, window_params = [{transform_indices = @transform_0, window_bounds = array<i64: 16, 18, 48>}, {pipeline_mode = #tpu.pipeline_mode<synchronous>, transform_indices = @transform_1, window_bounds = array<i64: 3, 48, 8>}, {pipeline_mode = #tpu.pipeline_mode<synchronous>, transform_indices = @transform_2, window_bounds = array<i64: 1, 8>}, {transform_indices = @transform_3, window_bounds = array<i64: 256, 8>}, {transform_indices = @transform_4, window_bounds = array<i64: 1, 1, 16>}]} {
    %cst = arith.constant 0.000000e+00 : f32
    %0 = vector.broadcast %cst : f32 to vector<256x8xf32>
    %c0 = arith.constant 0 : index
    %c0_0 = arith.constant 0 : index
    %c0_1 = arith.constant 0 : index
    %1 = vector.load %arg1[%c0, %c0_0, %c0_1] : memref<16x18x48xbf16, #tpu.memory_space<vmem>>, vector<16x16x48xbf16>
    %2 = vector.shape_cast %1 : vector<16x16x48xbf16> to vector<256x48xbf16>
    %c0_2 = arith.constant 0 : index
    %c0_3 = arith.constant 0 : index
    %c0_4 = arith.constant 0 : index
    %3 = vector.load %arg2[%c0_2, %c0_3, %c0_4] : memref<3x48x8xbf16, #tpu.memory_space<vmem>>, vector<1x48x8xbf16>
    %4 = vector.shape_cast %3 : vector<1x48x8xbf16> to vector<48x8xbf16>
    %cst_5 = arith.constant dense<0.000000e+00> : vector<256x8xf32>
    %5 = tpu.matmul %2, %4, %cst_5 {dimension_numbers = #tpu.dot_dimension_numbers<[1], [0], [0], [1], [0, 0, 1, 1], [], []>} : vector<256x48xbf16>, vector<48x8xbf16>, vector<256x8xf32> -> vector<256x8xf32>
    %6 = arith.addf %0, %5 : vector<256x8xf32>
    %c0_6 = arith.constant 0 : index
    %c1 = arith.constant 1 : index
    %c0_7 = arith.constant 0 : index
    %7 = vector.load %arg1[%c0_6, %c1, %c0_7] : memref<16x18x48xbf16, #tpu.memory_space<vmem>>, vector<16x16x48xbf16>
    %8 = vector.shape_cast %7 : vector<16x16x48xbf16> to vector<256x48xbf16>
    %c1_8 = arith.constant 1 : index
    %c0_9 = arith.constant 0 : index
    %c0_10 = arith.constant 0 : index
    %9 = vector.load %arg2[%c1_8, %c0_9, %c0_10] : memref<3x48x8xbf16, #tpu.memory_space<vmem>>, vector<1x48x8xbf16>
    %10 = vector.shape_cast %9 : vector<1x48x8xbf16> to vector<48x8xbf16>
    %cst_11 = arith.constant dense<0.000000e+00> : vector<256x8xf32>
    %11 = tpu.matmul %8, %10, %cst_11 {dimension_numbers = #tpu.dot_dimension_numbers<[1], [0], [0], [1], [0, 0, 1, 1], [], []>} : vector<256x48xbf16>, vector<48x8xbf16>, vector<256x8xf32> -> vector<256x8xf32>
    %12 = arith.addf %6, %11 : vector<256x8xf32>
    %c0_12 = arith.constant 0 : index
    %c2 = arith.constant 2 : index
    %c0_13 = arith.constant 0 : index
    %13 = vector.load %arg1[%c0_12, %c2, %c0_13] : memref<16x18x48xbf16, #tpu.memory_space<vmem>>, vector<16x16x48xbf16>
    %14 = vector.shape_cast %13 : vector<16x16x48xbf16> to vector<256x48xbf16>
    %c2_14 = arith.constant 2 : index
    %c0_15 = arith.constant 0 : index
    %c0_16 = arith.constant 0 : index
    %15 = vector.load %arg2[%c2_14, %c0_15, %c0_16] : memref<3x48x8xbf16, #tpu.memory_space<vmem>>, vector<1x48x8xbf16>
    %16 = vector.shape_cast %15 : vector<1x48x8xbf16> to vector<48x8xbf16>
    %cst_17 = arith.constant dense<0.000000e+00> : vector<256x8xf32>
    %17 = tpu.matmul %14, %16, %cst_17 {dimension_numbers = #tpu.dot_dimension_numbers<[1], [0], [0], [1], [0, 0, 1, 1], [], []>} : vector<256x48xbf16>, vector<48x8xbf16>, vector<256x8xf32> -> vector<256x8xf32>
    %18 = arith.addf %12, %17 : vector<256x8xf32>
    %c0_18 = arith.constant 0 : index
    %c0_19 = arith.constant 0 : index
    %19 = vector.load %arg3[%c0_18, %c0_19] : memref<1x8xf32, #tpu.memory_space<vmem>>, vector<1x8xf32>
    %20 = vector.broadcast %19 : vector<1x8xf32> to vector<256x8xf32>
    %21 = arith.addf %18, %20 : vector<256x8xf32>
    %22 = arith.truncf %21 : vector<256x8xf32> to vector<256x8xbf16>
    %c0_20 = arith.constant 0 : index
    %c0_21 = arith.constant 0 : index
    %23 = vector.load %arg4[%c0_20, %c0_21] : memref<256x8xbf16, #tpu.memory_space<vmem>>, vector<256x8xbf16>
    tpu.vector_store %arg4[%c0_20, %c0_21], %22 {strides = array<i32>} : memref<256x8xbf16, #tpu.memory_space<vmem>>, vector<256x8xbf16>,
    %c0_22 = arith.constant 0 : index
    %c0_23 = arith.constant 0 : index
    %24 = vector.load %arg4[%c0_22, %c0_23] : memref<256x8xbf16, #tpu.memory_space<vmem>>, vector<256x8xbf16>
    %25 = arith.extf %24 : vector<256x8xbf16> to vector<256x8xf32>
    %c256_i32 = arith.constant 256 : i32
    %26 = arith.muli %arg0, %c256_i32 : i32
    %27 = tpu.iota {dimensions = array<i32: 0>} : vector<256x1xi32>
    %28 = vector.broadcast %26 : i32 to vector<256x1xi32>
    %29 = arith.addi %28, %27 : vector<256x1xi32>
    %c512_i32 = arith.constant 512 : i32
    %30 = vector.broadcast %c512_i32 : i32 to vector<256x1xi32>
    %31 = arith.cmpi slt, %29, %30 : vector<256x1xi32>
    %32 = arith.extui %31 : vector<256x1xi1> to vector<256x1xi32>
    %33 = arith.sitofp %32 : vector<256x1xi32> to vector<256x1xf32>
    %cst_24 = arith.constant dense<0.000000e+00> : vector<1xf32>
    %34 = vector.multi_reduction <add>, %33, %cst_24 [0] : vector<256x1xf32> to vector<1xf32>
    %35 = vector.shape_cast %34 : vector<1xf32> to vector<1x1xf32>
    %cst_25 = arith.constant 1.000000e+00 : f32
    %36 = vector.broadcast %cst_25 : f32 to vector<1x1xf32>
    %37 = arith.maximumf %35, %36 : vector<1x1xf32>
    %38 = vector.broadcast %33 : vector<256x1xf32> to vector<256x8xf32>
    %39 = arith.mulf %25, %38 : vector<256x8xf32>
    %cst_26 = arith.constant dense<0.000000e+00> : vector<8xf32>
    %40 = vector.multi_reduction <add>, %39, %cst_26 [0] : vector<256x8xf32> to vector<8xf32>
    %41 = vector.shape_cast %40 : vector<8xf32> to vector<1x8xf32>
    %42 = vector.broadcast %37 : vector<1x1xf32> to vector<1x8xf32>
    %43 = arith.divf %41, %42 : vector<1x8xf32>
    %44 = vector.broadcast %43 : vector<1x8xf32> to vector<256x8xf32>
    %45 = arith.subf %25, %44 : vector<256x8xf32>
    %46 = vector.broadcast %33 : vector<256x1xf32> to vector<256x8xf32>
    %47 = arith.mulf %45, %46 : vector<256x8xf32>
    %48 = arith.mulf %47, %47 : vector<256x8xf32>
    %cst_27 = arith.constant dense<0.000000e+00> : vector<8xf32>
    %49 = vector.multi_reduction <add>, %48, %cst_27 [0] : vector<256x8xf32> to vector<8xf32>
    %50 = vector.shape_cast %49 : vector<8xf32> to vector<1x8xf32>
    %51 = tpu.concatenate %41, %50 in 1 : vector<1x8xf32>, vector<1x8xf32> -> vector<1x16xf32>
    %52 = vector.shape_cast %51 : vector<1x16xf32> to vector<1x1x16xf32>
    %c0_28 = arith.constant 0 : index
    %c0_29 = arith.constant 0 : index
    %c0_30 = arith.constant 0 : index
    %53 = vector.load %arg5[%c0_28, %c0_29, %c0_30] : memref<1x1x16xf32, #tpu.memory_space<vmem>>, vector<1x1x16xf32>
    tpu.vector_store %arg5[%c0_28, %c0_29, %c0_30], %52 {strides = array<i32>} : memref<1x1x16xf32, #tpu.memory_space<vmem>>, vector<1x1x16xf32>,
    return
  }
  func.func @transform_0(%arg0: i32) -> (i32, i32, i32) {
    %c0_i32 = arith.constant 0 : i32
    %c0_i32_0 = arith.constant 0 : i32
    %c0_i32_1 = arith.constant 0 : i32
    return %arg0, %c0_i32, %c0_i32_0 : i32, i32, i32
  }
  func.func @transform_1(%arg0: i32) -> (i32, i32, i32) {
    %c0_i32 = arith.constant 0 : i32
    %c0_i32_0 = arith.constant 0 : i32
    %c0_i32_1 = arith.constant 0 : i32
    %c0_i32_2 = arith.constant 0 : i32
    return %c0_i32, %c0_i32_0, %c0_i32_1 : i32, i32, i32
  }
  func.func @transform_2(%arg0: i32) -> (i32, i32) {
    %c0_i32 = arith.constant 0 : i32
    %c0_i32_0 = arith.constant 0 : i32
    %c0_i32_1 = arith.constant 0 : i32
    return %c0_i32, %c0_i32_0 : i32, i32
  }
  func.func @transform_3(%arg0: i32) -> (i32, i32) {
    %c0_i32 = arith.constant 0 : i32
    %c0_i32_0 = arith.constant 0 : i32
    return %arg0, %c0_i32 : i32, i32
  }
  func.func @transform_4(%arg0: i32) -> (i32, i32, i32) {
    %c0_i32 = arith.constant 0 : i32
    %c0_i32_0 = arith.constant 0 : i32
    %c0_i32_1 = arith.constant 0 : i32
    return %arg0, %c0_i32, %c0_i32_0 : i32, i32, i32
  }
}

</mosaic_0001>

<bundles_post_ra>
// kernel: tpu_custom_call.1
= control target key start
LH: loop header
LB: loop body
LE: loop exit
PB: predicated region body
PF: predicated region fallthrough
CT: control target
= control target key end

     0   :  { %10 = vsyncpa [#allocation3], 0  ;;  %s4683_s0 = inlined_call_operand.vmem [shape: bf16[32,18,48], index: 0, kind: input, shape index: {}]   ;;  %s4684_s1 = inlined_call_operand.vmem [shape: bf16[3,48,8], index: 1, kind: input, shape index: {}]   ;;  %s4685_s2 = inlined_call_operand.vmem [shape: f32[1,8], index: 2, kind: input, shape index: {}]   ;;  %s4686_s3 = inlined_call_operand.vmem [shape: bf16[512,8], index: 3, kind: output, shape index: {0}]   ;;  %s4687_s4 = inlined_call_operand.hbm [shape: f32[2,1,16], index: 4, kind: output, shape index: {1}]  }
   0x1   :  { %12 = vsyncpa [#allocation3 + $0x1], 0  ;;  %s3223_s15 = smov 0   ;;  %s3225_s16 = smov 0  }
   0x2   :  { %s3227_s17 = smov 0   ;;  %s3229_s18 = smov 0  }
   0x3 LB: > { %s3244_s19 = sadd.s32 4294967295, %s3193_s18   ;;  %s2566_s20 = sadd.s32 4294967294, %s3193_s18   ;;  %s3193_s18 = sphi %s3229_s18, %s4869_s18   ;;  %s3189_s17 = sphi %s3227_s17, %s4868_s17   ;;  %s3185_s16 = sphi %s3225_s16, %s4867_s16   ;;  %s3181_s15 = sphi %s3223_s15, %s4866_s15  }
   0x4   : > { %s3248_s21 = sadd.s32 1, %s3193_s18   ;;  %s119_s22 = sadd.s32 1, %s3189_s17 }
   0x5   : > { %s116_s23 = ssub.s32 %s3193_s18, %s3248_s21  ;;  %p129_p0 = scmp.ne.s32.totalorder %s3189_s17, %s3185_s16 }
   0x6   : > { %p117_p1 = scmp.eq.s32.totalorder %s116_s23, 0  ;;  %p130_p2 = scmp.eq.s32.totalorder %s3244_s19, 1 }
   0x7   : > { %p135_p3 = scmp.ne.s32.totalorder %s3185_s16, %s3181_s15  ;;  %p136_p4 = scmp.eq.s32.totalorder %s2566_s20, 1 }
   0x8   : > { %s3259_s24 = scalar_select %p117_p1, %s3189_s17, %s119_s22  }
   0x9   : > { %p3261_p5 = por %p130_p2, %p129_p0  ;;  %p3265_p6 = por %p136_p4, %p135_p3 }
   0xa   : > { %p2569_p7 = scmp.ge.s32.totalorder %s3193_s18, 1  ;;  %p170_p8 = scmp.lt.s32.totalorder %s3193_s18, 3 }
   0xc   : > { %p171_p9 = pnand %p2569_p7, %p170_p8 }
   0xe   : > { %174 = sbr.rel (%p171_p9) target bundleno = 623 (0x26f), region = 32 }
  0x13   : > { %v3106_v0 = vld [vmem:[%s4684_s1 + $0x28] sm:$0xff]   ;;  %s3275_s29 = sshll.u32 %s3244_s19, 4  ;;  %v3107_v1 = vld [vmem:[%s4684_s1 + $0x20] sm:$0xff]   ;;  %v3108_v2 = vld [vmem:[%s4684_s1 + $0x18] sm:$0xff]   ;;  %vm269_vm0 = vsmask.f32 3328 }
  0x14   : > { %p202_p10 = scmp.lt.s32.totalorder %s3275_s29, 31  ;;  %3058 = vmatprep.subr.bf16.mxu1 %v3106_v0  ;;  %2944 = vmatprep.subr.bf16.mxu0 %v3106_v0  ;;  %vm270_vm1 = vsmask.f32 7440  ;;  %v3288_v3 = vld [vmem:[%s4684_s1 + $0x10] sm:$0xff]   ;;  %v3298_v4 = vld [vmem:[%s4684_s1 + $0x40] sm:$0xff]   ;;  %vm729_vm2 = vcmask 392192   ;;  %s4646_s6 = scalar_lea.hbm %s4687_s4, %s3275_s29 }
  0x15   : > { %3061 = vmatpush3.bf16.msra.mxu1 %v3106_v0  ;;  %2945 = vmatpush3.bf16.msra.mxu0 %v3106_v0  ;;  %vm3339_vm3 = vmor %vm269_vm0, %vm270_vm1  ;;  %vm1294_vm4 = vcmask 1042432   ;;  %vm1295_vm5 = vcmask 1046532   ;;  %s2572_s10 = sshll.u32 %s3244_s19, 5  ;;  %s3196_s22 = smov 8  }
  0x16   : > { %s203_s8 = scalar_select %p202_p10, %s3275_s29, 31  ;;  %3059 = vmatprep.subr.bf16.mxu1 %v3107_v1  ;;  %2946 = vmatprep.subr.bf16.mxu0 %v3107_v1  ;;  %vm3624_vm6 = vmor %vm1294_vm4, %vm1295_vm5 }
  0x17   : > { %p209_p11 = scmp.lt.s32.totalorder %s2572_s10, 63  ;;  %s199_s23 = sand.u32 1, %s3185_s16  }
  0x18   : > { %s3064_s9 = smul.u32 12, %s203_s8  ;;  %s200_s27 = scalar_lea.vmem [#allocation2], %s199_s23 }
  0x19   : > { %3062 = vmatpush3.bf16.msra.mxu1 %v3107_v1  ;;  %2947 = vmatpush3.bf16.msra.mxu0 %v3107_v1  ;;  %s4871_s10 = smov (!%p209_p11, %s2572_s10), 63  ;;  %s2486_s28 = sshll.u32 %s200_s27, 4  ;;  %s2487_s28 = int_to_ptr.vmem [resolvable:$true] %s2486_s28 }
  0x1a   : > { %s3293_s14 = scalar_lea.vmem %s4683_s0, %s3064_s9  ;;  %3060 = vmatprep.subr.bf16.mxu1 %v3108_v2  ;;  %2948 = vmatprep.subr.bf16.mxu0 %v3108_v2  ;;  %s2740_s9 = sshll.u32 %s3244_s19, 8 }
  0x1b   : > { %v3301_v5 = vld [vmem:[%s3293_s14] sm:$0xf]  ;;  %v3304_v6 = vld [vmem:[%s3293_s14 + $0x4] sm:$0xf]  ;;  %v3307_v7 = vld [vmem:[%s3293_s14 + $0x8] sm:$0x1] }
  0x1c   : > { %v273_v8 = vshrl.u32 %v3301_v5, 16  ;;  %v276_v9 = vshll.u32 %v3301_v5, 16  ;;  %v282_v10 = vshll.u32 %v3304_v6, 16  ;;  %v286_v11 = vshrl.u32 %v3304_v6, 16  ;;  %v3314_v12 = vld [vmem:[%s3293_s14 + $0x60] sm:$0xf] }
  0x1d   : > { %4760 = vst [vmem:[#allocation5_spill] sm:$0xff] %v3314_v12  ;;  %v292_v13 = vshll.u32 %v3307_v7, 16  ;;  %v3319_v15 = vld [vmem:[%s3293_s14 + $0x64] sm:$0xf]  ;;  %v3322_v16 = vld [vmem:[%s3293_s14 + $0x68] sm:$0x1]  ;;  %3063 = vmatpush3.bf16.msra.mxu1 %v3108_v2  ;;  %2949 = vmatpush3.bf16.msra.mxu0 %v3108_v2 }
  0x1e   : > { %v275_v17 = vrot.slane %v273_v8, 4  ;;  %v278_v18 = vrot.slane %v276_v9, 5  ;;  %v284_v19 = vrot.slane %v282_v10, 5  ;;  %v288_v20 = vrot.slane %v286_v11, 4  ;;  %2982 = vmatprep.subr.bf16.mxu1 %v3288_v3  ;;  %3020 = vmatprep.subr.bf16.mxu0 %v3298_v4  ;;  %v3332_v29 = vld [vmem:[%s3293_s14 + $0xc] sm:$0xf] }
  0x1f   : > { %v294_v21 = vrot.slane %v292_v13, 5  ;;  %v465_v22 = vshrl.u32 %v3314_v12, 16  ;;  %v468_v23 = vshll.u32 %v3314_v12, 16  ;;  %v474_v24 = vshll.u32 %v3319_v15, 16  ;;  %v3335_v30 = vld [vmem:[%s3293_s14 + $0x10] sm:$0xf] }
  0x20   : > { %v279_v25 = vor.u32 %v278_v18, %v275_v17  ;;  %v289_v26 = vor.u32 %v288_v20, %v284_v19  ;;  %v478_v27 = vshrl.u32 %v3319_v15, 16  ;;  %v484_v28 = vshll.u32 %v3322_v16, 16  ;;  %v3346_v41 = vld [vmem:[%s3293_s14 + $0x14] sm:$0x1]  ;;  %v3357_v53 = vld [vmem:[%s3293_s14 + $0x6c] sm:$0xf] }
  0x21   : > { %v467_v32 = vrot.slane %v465_v22, 4  ;;  %v470_v33 = vrot.slane %v468_v23, 5  ;;  %v476_v34 = vrot.slane %v474_v24, 5  ;;  %v297_v42 = vshrl.u32 %v3332_v29, 16  ;;  %4763 = vst [vmem:[#allocation6_spill] sm:$0xff] %v3357_v53  ;;  %s2573_s12 = sshll.u32 %s4871_s10, 2 }
  0x22   : > { %v280_v36 = vrot.slane %v279_v25, 4  ;;  %v290_v37 = vrot.slane %v289_v26, 4  ;;  %v480_v38 = vrot.slane %v478_v27, 4  ;;  %v486_v39 = vrot.slane %v484_v28, 5  ;;  %v3361_v58 = vld [vmem:[%s3293_s14 + $0x70] sm:$0xf]  ;;  %s4071_s20 = scalar_lea.vmem %s4686_s3, %s2573_s12 }
  0x23   : > { %v471_v40 = vor.u32 %v470_v33, %v467_v32  ;;  %v300_v43 = vshll.u32 %v3332_v29, 16  ;;  %v306_v44 = vshll.u32 %v3335_v30, 16  ;;  %v310_v48 = vshrl.u32 %v3335_v30, 16  ;;  %v3369_v63 = vld [vmem:[%s3293_s14 + $0x74] sm:$0x1]  ;;  %s2470_s7 = scalar_lea.sflag [#allocation3], %s199_s23 }
  0x24   : > { %v285_v45 = vsel %vm3339_vm3, %v280_v36, %v284_v19  ;;  %v295_v46 = vsel %vm3339_vm3, %v290_v37, %v294_v21  ;;  %v481_v47 = vor.u32 %v480_v38, %v476_v34  ;;  %v299_v51 = vrot.slane %v297_v42, 4  ;;  %4764 = vst [vmem:[#allocation7_spill] sm:$0xff] %v3369_v63  ;;  %v3375_v9 = vld [vmem:[%s3293_s14 + $0x18] sm:$0xf]  ;;  %v3382_v22 = vld [vmem:[%s3293_s14 + $0x1c] sm:$0xf] }
  0x25   : > { %v2580_v49 = vcombine.low %v285_v45, %v295_v46  ;;  %v472_v50 = vrot.slane %v471_v40, 4  ;;  %v302_v52 = vrot.slane %v300_v43, 5  ;;  %v308_v55 = vrot.slane %v306_v44, 5  ;;  %v3388_v26 = vld [vmem:[%s3293_s14 + $0x20] sm:$0x1]  ;;  %v3112_v42 = vld [vmem:[%s4684_s1 + $0x38] sm:$0xff]  }
  0x26   : > { %v482_v54 = vrot.slane %v481_v47, 4  ;;  %v312_v56 = vrot.slane %v310_v48, 4  ;;  %v316_v57 = vshll.u32 %v3346_v41, 16  ;;  %v489_v8 = vshrl.u32 %v3357_v53, 16  ;;  %v3395_v36 = vld [vmem:[%s3293_s14 + $0x78] sm:$0xf] }
  0x27   : > { %2950 = vmatprep.mubr.msk.bf16.mxu0 %vm729_vm2, %v2580_v49  ;;  %v477_v59 = vsel %vm3339_vm3, %v472_v50, %v476_v34  ;;  %v303_v60 = vor.u32 %v302_v52, %v299_v51  ;;  %v492_v13 = vshll.u32 %v3357_v53, 16  ;;  %v498_v17 = vshll.u32 %v3361_v58, 16  ;;  %4765 = vst [vmem:[#allocation8_spill] sm:$0xff] %v3395_v36  ;;  %v3404_v47 = vld [vmem:[%s3293_s14 + $0x7c] sm:$0xf]  ;;  %s3133_s8 = scalar_lea.vmem %s2487_s28, 16 }
  0x28   : > { %v487_v0 = vsel %vm3339_vm3, %v482_v54, %v486_v39  ;;  %v313_v1 = vor.u32 %v312_v56, %v308_v55  ;;  %v318_v2 = vrot.slane %v316_v57, 5  ;;  %v491_v19 = vrot.slane %v489_v8, 4  ;;  %4766 = vst [vmem:[#allocation9_spill] sm:$0xff] %v3404_v47  ;;  %v3411_v57 = vld [vmem:[%s3293_s14 + $0x80] sm:$0x1]  ;;  %p3134_p12 = scmp.ne.s32.totalorder %s2487_s28, %s3133_s8 }
  0x29   : > { %v2588_v10 = vcombine.low %v477_v59, %v487_v0  ;;  %v304_v11 = vrot.slane %v303_v60, 4  ;;  %v502_v20 = vshrl.u32 %v3361_v58, 16  ;;  %v508_v21 = vshll.u32 %v3369_v63, 16  ;;  %4767 = vst [vmem:[#allocation10_spill] sm:$0xff] %v3411_v57  ;;  %v3589_v12 = vld [vmem:[%s3293_s14 + $0x5c] sm:$0x1] }
  0x2a   : > { %v314_v18 = vrot.slane %v313_v1, 4  ;;  %v494_v24 = vrot.slane %v492_v13, 5  ;;  %v500_v25 = vrot.slane %v498_v17, 5  ;;  %v321_v27 = vshrl.u32 %v3375_v9, 16  ;;  %v3426_v17 = vld [vmem:[%s3293_s14 + $0x28] sm:$0xf]  ;;  %p3135_p13 = pnand %p3134_p12, %p3261_p5 }
  0x2b   : > { %2966 = vmatprep.mubr.msk.bf16.mxu1 %vm729_vm2, %v2588_v10  ;;  %v309_v23 = vsel %vm3339_vm3, %v304_v11, %v308_v55  ;;  %v504_v32 = vrot.slane %v502_v20, 4  ;;  %v510_v33 = vrot.slane %v508_v21, 5  ;;  %v324_v34 = vshll.u32 %v3375_v9, 16  ;;  %v1250_v31 = vld [vmem:[%s3293_s14 + $0x30] sm:$0xe] }
  0x2c   : > { %v319_v28 = vsel %vm3339_vm3, %v314_v18, %v318_v2  ;;  %v495_v38 = vor.u32 %v494_v24, %v491_v19  ;;  %v323_v39 = vrot.slane %v321_v27, 4  ;;  %v330_v40 = vshll.u32 %v3382_v22, 16  ;;  %v3417_v2 = vld [vmem:[%s3293_s14 + $0x24] sm:$0xf]  ;;  %v3111_v24 = vld [vmem:[%s4684_s1 + $0x8] sm:$0xff]   ;;  %p3136_p0 = pneg %p3135_p13 }
  0x2d   : > { %v2581_v37 = vcombine.low %v309_v23, %v319_v28  ;;  %v505_v43 = vor.u32 %v504_v32, %v500_v25  ;;  %v326_v44 = vrot.slane %v324_v34, 5  ;;  %v334_v45 = vshrl.u32 %v3382_v22, 16  ;;  %v3430_v23 = vld [vmem:[%s3293_s14 + $0x2c] sm:$0x1] }
  0x2e   : > { %v340_v46 = vshll.u32 %v3388_v26, 16  ;;  %v496_v48 = vrot.slane %v495_v38, 4  ;;  %v332_v49 = vrot.slane %v330_v40, 5  ;;  %v513_v50 = vshrl.u32 %v3395_v36, 16 }
  0x2f   : > { %2951 = vmatmul.mubr.msk.bf16.vlgmr.msra.gmra.mxu0 %vm729_vm2, %v2581_v37  ;;  %v516_v51 = vshll.u32 %v3395_v36, 16  ;;  %v506_v52 = vrot.slane %v505_v43, 4  ;;  %v327_v54 = vor.u32 %v326_v44, %v323_v39  ;;  %v336_v55 = vrot.slane %v334_v45, 4 }
  0x30   : > { %3021 = vmatpush3.bf16.msra.mxu0 %v3298_v4  ;;  %v342_v56 = vrot.slane %v340_v46, 5  ;;  %v501_v59 = vsel %vm3339_vm3, %v496_v48, %v500_v25  ;;  %v515_v60 = vrot.slane %v513_v50, 4  ;;  %v522_v1 = vshll.u32 %v3404_v47, 16  ;;  %v3114_v4 = vld [vmem:[%s4684_s1 + $0x30] sm:$0xff]  }
  0x31   : > { %v518_v0 = vrot.slane %v516_v51, 5  ;;  %3022 = vmatprep.subr.bf16.mxu0 %v3112_v42  ;;  %v511_v8 = vsel %vm3339_vm3, %v506_v52, %v510_v33  ;;  %v328_v10 = vrot.slane %v327_v54, 4  ;;  %v337_v11 = vor.u32 %v336_v55, %v332_v49  ;;  %v3439_v33 = vld [vmem:[%s3293_s14 + $0x84] sm:$0xf]  ;;  %v3458_v55 = vld [vmem:[%s3293_s14 + $0x8c] sm:$0x1] }
  0x32   : > { %v526_v13 = vshrl.u32 %v3404_v47, 16  ;;  %v2589_v18 = vcombine.low %v501_v59, %v511_v8  ;;  %v524_v20 = vrot.slane %v522_v1, 5  ;;  %v532_v21 = vshll.u32 %v3411_v57, 16  ;;  %v3466_v8 = vld [vmem:[%s3293_s14 + $0x30] sm:$0xf] }
  0x33   : > { %v519_v19 = vor.u32 %v518_v0, %v515_v60  ;;  %v333_v25 = vsel %vm3339_vm3, %v328_v10, %v332_v49  ;;  %v338_v27 = vrot.slane %v337_v11, 4  ;;  %v345_v32 = vshrl.u32 %v3417_v2, 16 }
  0x34   : > { %v528_v28 = vrot.slane %v526_v13, 4  ;;  %3023 = vmatpush3.bf16.msra.mxu0 %v3112_v42  ;;  %2967 = vmatmul.mubr.msk.bf16.vlgmr.msra.gmra.mxu1 %vm729_vm2, %v2589_v18  ;;  %v534_v37 = vrot.slane %v532_v21, 5  ;;  %v348_v38 = vshll.u32 %v3417_v2, 16  ;;  %v354_v39 = vshll.u32 %v3426_v17, 16  ;;  %v3449_v42 = vld [vmem:[%s3293_s14 + $0x88] sm:$0xf] }
  0x35   : > { %v520_v34 = vrot.slane %v519_v19, 4  ;;  %3024 = vmatprep.subr.bf16.mxu0 %v3114_v4  ;;  %2983 = vmatpush3.bf16.msra.mxu1 %v3288_v3  ;;  %v343_v40 = vsel %vm3339_vm3, %v338_v27, %v342_v56  ;;  %v347_v44 = vrot.slane %v345_v32, 4  ;;  %v358_v45 = vshrl.u32 %v3426_v17, 16  ;;  %v3113_v3 = vld [vmem:[%s4684_s1] sm:$0xff]  }
  0x36   : > { %v529_v43 = vor.u32 %v528_v28, %v524_v20  ;;  %v2582_v46 = vcombine.low %v333_v25, %v343_v40  ;;  %v350_v49 = vrot.slane %v348_v38, 5  ;;  %v356_v50 = vrot.slane %v354_v39, 5  ;;  %2984 = vmatprep.subr.bf16.mxu1 %v3111_v24  ;;  %v3479_v38 = vld [vmem:[%s3293_s14 + $0x38] sm:$0x1] }
  0x37   : > { %v525_v48 = vsel %vm3339_vm3, %v520_v34, %v524_v20  ;;  %v360_v52 = vrot.slane %v358_v45, 4  ;;  %v364_v54 = vshll.u32 %v3430_v23, 16  ;;  %v537_v56 = vshrl.u32 %v3439_v33, 16 }
  0x38   : > { %v530_v51 = vrot.slane %v529_v43, 4  ;;  %3025 = vmatpush3.bf16.msra.mxu0 %v3114_v4  ;;  %2954 = vmatprep.mubr.msk.bf16.mxu0 %vm729_vm2, %v2582_v46  ;;  %v351_v59 = vor.u32 %v350_v49, %v347_v44  ;;  %v540_v60 = vshll.u32 %v3439_v33, 16  ;;  %v546_v0 = vshll.u32 %v3449_v42, 16  ;;  %v3471_v4 = vld [vmem:[%s3293_s14 + $0x34] sm:$0xf] }
  0x39   : > { %v550_v1 = vshrl.u32 %v3449_v42, 16  ;;  %v361_v11 = vor.u32 %v360_v52, %v356_v50  ;;  %v366_v13 = vrot.slane %v364_v54, 5  ;;  %v539_v18 = vrot.slane %v537_v56, 4  ;;  %2985 = vmatpush3.bf16.msra.mxu1 %v3111_v24  ;;  %v3484_v43 = vld [vmem:[%s3293_s14 + $0x90] sm:$0xf] }
  0x3a   : > { %v535_v10 = vsel %vm3339_vm3, %v530_v51, %v534_v37  ;;  %v352_v20 = vrot.slane %v351_v59, 4  ;;  %v542_v21 = vrot.slane %v540_v60, 5  ;;  %v548_v25 = vrot.slane %v546_v0, 5  ;;  %2986 = vmatprep.subr.bf16.mxu1 %v3113_v3  ;;  %v3489_v49 = vld [vmem:[%s3293_s14 + $0x94] sm:$0xf] }
  0x3b   : > { %v2590_v19 = vcombine.low %v525_v48, %v535_v10  ;;  %v362_v27 = vrot.slane %v361_v11, 4  ;;  %v552_v28 = vrot.slane %v550_v1, 4  ;;  %v556_v32 = vshll.u32 %v3458_v55, 16  ;;  %v3498_v11 = vld [vmem:[%s3293_s14 + $0x98] sm:$0x1] }
  0x3c   : > { %v369_v34 = vshrl.u32 %v3466_v8, 16  ;;  %v357_v24 = vsel %vm3339_vm3, %v352_v20, %v356_v50  ;;  %v543_v37 = vor.u32 %v542_v21, %v539_v18  ;;  %v372_v39 = vshll.u32 %v3466_v8, 16  ;;  %v3503_v18 = vld [vmem:[%s3293_s14 + $0x3c] sm:$0xf] }
  0x3d   : > { %2970 = vmatprep.mubr.msk.bf16.mxu1 %vm729_vm2, %v2590_v19  ;;  %v378_v40 = vshll.u32 %v3471_v4, 16  ;;  %v367_v44 = vsel %vm3339_vm3, %v362_v27, %v366_v13  ;;  %v553_v45 = vor.u32 %v552_v28, %v548_v25  ;;  %v558_v46 = vrot.slane %v556_v32, 5  ;;  %2987 = vmatpush3.bf16.msra.mxu1 %v3113_v3  ;;  %v3508_v28 = vld [vmem:[%s3293_s14 + $0x40] sm:$0xf] }
  0x3e   : > { %v371_v48 = vrot.slane %v369_v34, 4  ;;  %v2583_v50 = vcombine.low %v357_v24, %v367_v44  ;;  %v544_v51 = vrot.slane %v543_v37, 4  ;;  %v374_v52 = vrot.slane %v372_v39, 5 }
  0x3f   : > { %v380_v54 = vrot.slane %v378_v40, 5  ;;  %v554_v56 = vrot.slane %v553_v45, 4  ;;  %v382_v59 = vshrl.u32 %v3471_v4, 16  ;;  %v388_v60 = vshll.u32 %v3479_v38, 16 }
  0x40   : > { %v561_v0 = vshrl.u32 %v3484_v43, 16  ;;  %2955 = vmatmul.mubr.msk.bf16.gmra.mxu0 %vm729_vm2, %v2583_v50  ;;  %v549_v1 = vsel %vm3339_vm3, %v544_v51, %v548_v25  ;;  %v375_v10 = vor.u32 %v374_v52, %v371_v48  ;;  %v564_v3 = vshll.u32 %v3484_v43, 16  ;;  %v3517_v48 = vld [vmem:[%s3293_s14 + $0x44] sm:$0x1]  ;;  %v3522_v52 = vld [vmem:[%s3293_s14 + $0x9c] sm:$0xf] }
  0x41   : > { %v570_v13 = vshll.u32 %v3489_v49, 16  ;;  %v559_v19 = vsel %vm3339_vm3, %v554_v56, %v558_v46  ;;  %v384_v20 = vrot.slane %v382_v59, 4  ;;  %v390_v21 = vrot.slane %v388_v60, 5 }
  0x42   : > { %v563_v27 = vrot.slane %v561_v0, 4  ;;  %v2591_v25 = vcombine.low %v549_v1, %v559_v19  ;;  %v376_v32 = vrot.slane %v375_v10, 4  ;;  %v566_v34 = vrot.slane %v564_v3, 5 }
  0x43   : > { %v572_v24 = vrot.slane %v570_v13, 5  ;;  %v385_v37 = vor.u32 %v384_v20, %v380_v54  ;;  %v574_v39 = vshrl.u32 %v3489_v49, 16  ;;  %v580_v40 = vshll.u32 %v3498_v11, 16 }
  0x44   : > { %v393_v44 = vshrl.u32 %v3503_v18, 16  ;;  %2971 = vmatmul.mubr.msk.bf16.gmra.mxu1 %vm729_vm2, %v2591_v25  ;;  %v381_v45 = vsel %vm3339_vm3, %v376_v32, %v380_v54  ;;  %v567_v46 = vor.u32 %v566_v34, %v563_v27  ;;  %v396_v50 = vshll.u32 %v3503_v18, 16  ;;  %v3529_v27 = vld [vmem:[%s3293_s14 + $0xa0] sm:$0xf] }
  0x45   : > { %v402_v51 = vshll.u32 %v3508_v28, 16  ;;  %v386_v56 = vrot.slane %v385_v37, 4  ;;  %v576_v59 = vrot.slane %v574_v39, 4  ;;  %v582_v60 = vrot.slane %v580_v40, 5  ;;  %v3535_v40 = vld [vmem:[%s3293_s14 + $0xa4] sm:$0x1] }
  0x46   : > { %v395_v0 = vrot.slane %v393_v44, 4  ;;  %v568_v1 = vrot.slane %v567_v46, 4  ;;  %v398_v10 = vrot.slane %v396_v50, 5  ;;  %v406_v54 = vshrl.u32 %v3508_v28, 16  ;;  %v3538_v44 = vld [vmem:[%s3293_s14 + $0x48] sm:$0xf] }
  0x47   : > { %v404_v3 = vrot.slane %v402_v51, 5  ;;  %v391_v13 = vsel %vm3339_vm3, %v386_v56, %v390_v21  ;;  %v577_v19 = vor.u32 %v576_v59, %v572_v24  ;;  %v412_v20 = vshll.u32 %v3517_v48, 16 }
  0x48   : > { %v585_v25 = vshrl.u32 %v3522_v52, 16  ;;  %v2584_v32 = vcombine.low %v381_v45, %v391_v13  ;;  %v573_v34 = vsel %vm3339_vm3, %v568_v1, %v572_v24  ;;  %v399_v37 = vor.u32 %v398_v10, %v395_v0 }
  0x49   : > { %v408_v39 = vrot.slane %v406_v54, 4  ;;  %v578_v46 = vrot.slane %v577_v19, 4  ;;  %v414_v21 = vrot.slane %v412_v20, 5  ;;  %v588_v51 = vshll.u32 %v3522_v52, 16  ;;  %v3548_v54 = vld [vmem:[%s3293_s14 + $0x4c] sm:$0xf] }
  0x4a   : > { %v587_v50 = vrot.slane %v585_v25, 4  ;;  %2958 = vmatprep.mubr.msk.bf16.mxu0 %vm729_vm2, %v2584_v32  ;;  %v400_v56 = vrot.slane %v399_v37, 4  ;;  %v594_v59 = vshll.u32 %v3529_v27, 16  ;;  %v598_v24 = vshrl.u32 %v3529_v27, 16  ;;  %v3554_v37 = vld [vmem:[%s3293_s14 + $0x50] sm:$0x1] }
  0x4b   : > { %v409_v45 = vor.u32 %v408_v39, %v404_v3  ;;  %v583_v0 = vsel %vm3339_vm3, %v578_v46, %v582_v60  ;;  %v590_v1 = vrot.slane %v588_v51, 5  ;;  %v604_v10 = vshll.u32 %v3535_v40, 16  ;;  %v3557_v46 = vld [vmem:[%s3293_s14 + $0xa8] sm:$0xf] }
  0x4c   : > { %v417_v13 = vshrl.u32 %v3538_v44, 16  ;;  %v2592_v19 = vcombine.low %v573_v34, %v583_v0  ;;  %v405_v20 = vsel %vm3339_vm3, %v400_v56, %v404_v3  ;;  %v596_v32 = vrot.slane %v594_v59, 5  ;;  %4768 = vst [vmem:[#allocation11_spill] sm:$0xff] %v3557_v46  ;;  %v3567_v0 = vld [vmem:[%s3293_s14 + $0xac] sm:$0xf] }
  0x4d   : > { %v410_v25 = vrot.slane %v409_v45, 4  ;;  %v591_v39 = vor.u32 %v590_v1, %v587_v50  ;;  %v600_v35 = vrot.slane %v598_v24, 4  ;;  %v606_v62 = vrot.slane %v604_v10, 5 }
  0x4e   : > { %v419_v60 = vrot.slane %v417_v13, 4  ;;  %2974 = vmatprep.mubr.msk.bf16.mxu1 %vm729_vm2, %v2592_v19  ;;  %v420_v51 = vshll.u32 %v3538_v44, 16  ;;  %v426_v3 = vshll.u32 %v3548_v54, 16  ;;  %v430_v56 = vshrl.u32 %v3548_v54, 16  ;;  %v3570_v19 = vld [vmem:[%s3293_s14 + $0xb0] sm:$0x1] }
  0x4f   : > { %v415_v34 = vsel %vm3339_vm3, %v410_v25, %v414_v21  ;;  %v592_v59 = vrot.slane %v591_v39, 4  ;;  %v601_v50 = vor.u32 %v600_v35, %v596_v32  ;;  %v436_v24 = vshll.u32 %v3554_v37, 16  ;;  %4769 = vst [vmem:[#allocation12_spill] sm:$0xff] %v3570_v19 }
  0x50   : > { %v2585_v45 = vcombine.low %v405_v20, %v415_v34  ;;  %v422_v1 = vrot.slane %v420_v51, 5  ;;  %v428_v10 = vrot.slane %v426_v3, 5  ;;  %v432_v13 = vrot.slane %v430_v56, 4  ;;  %v3579_v3 = vld [vmem:[%s3293_s14 + $0x54] sm:$0xf] }
  0x51   : > { %v609_v21 = vshrl.u32 %v3557_v46, 16  ;;  %v597_v20 = vsel %vm3339_vm3, %v592_v59, %v596_v32  ;;  %v602_v25 = vrot.slane %v601_v50, 4  ;;  %v438_v35 = vrot.slane %v436_v24, 5  ;;  %4770 = vst [vmem:[#allocation13_spill] sm:$0xff] %v3579_v3  ;;  %v3586_v50 = vld [vmem:[%s3293_s14 + $0x58] sm:$0xf] }
  0x52   : > { %2959 = vmatmul.mubr.msk.bf16.gmra.mxu0 %vm729_vm2, %v2585_v45  ;;  %v612_v39 = vshll.u32 %v3557_v46, 16  ;;  %v423_v34 = vor.u32 %v422_v1, %v419_v60  ;;  %v433_v14 = vor.u32 %v432_v13, %v428_v10  ;;  %v618_v51 = vshll.u32 %v3567_v0, 16  ;;  %v1247_v46 = vld [vmem:[%s3293_s14 + $0xc] sm:$0xe] }
  0x53   : > { %v611_v61 = vrot.slane %v609_v21, 4  ;;  %v607_v56 = vsel %vm3339_vm3, %v602_v25, %v606_v62  ;;  %v622_v32 = vshrl.u32 %v3567_v0, 16  ;;  %v628_v59 = vshll.u32 %v3570_v19, 16 }
  0x54   : > { %v614_v45 = vrot.slane %v612_v39, 5  ;;  %v2593_v60 = vcombine.low %v597_v20, %v607_v56  ;;  %v424_v24 = vrot.slane %v423_v34, 4  ;;  %v434_v1 = vrot.slane %v433_v14, 4 }
  0x55   : > { %v620_v13 = vrot.slane %v618_v51, 5  ;;  %v624_v36 = vrot.slane %v622_v32, 4  ;;  %v630_v53 = vrot.slane %v628_v59, 5  ;;  %v441_v62 = vshrl.u32 %v3579_v3, 16  ;;  %v3603_v32 = vld [vmem:[%s3293_s14 + $0xb8] sm:$0xf] }
  0x56   : > { %v615_v21 = vor.u32 %v614_v45, %v611_v61  ;;  %2975 = vmatmul.mubr.msk.bf16.gmra.mxu1 %vm729_vm2, %v2593_v60  ;;  %v429_v25 = vsel %vm3339_vm3, %v424_v24, %v428_v10  ;;  %v439_v39 = vsel %vm3339_vm3, %v434_v1, %v438_v35  ;;  %v444_v14 = vshll.u32 %v3579_v3, 16  ;;  %v3600_v61 = vld [vmem:[%s3293_s14 + $0xb4] sm:$0xf]  ;;  %v3611_v3 = vld [vmem:[%s3293_s14 + $0xbc] sm:$0x1] }
  0x57   : > { %v450_v20 = vshll.u32 %v3586_v50, 16  ;;  %4771 = vst [vmem:[#allocation14_spill] sm:$0xff] %v3600_v61  ;;  %v2586_v34 = vcombine.low %v429_v25, %v439_v39  ;;  %v625_v56 = vor.u32 %v624_v36, %v620_v13  ;;  %v443_v45 = vrot.slane %v441_v62, 4 }
  0x58   : > { %v616_v51 = vrot.slane %v615_v21, 4  ;;  %v446_v59 = vrot.slane %v444_v14, 5  ;;  %v454_v10 = vshrl.u32 %v3586_v50, 16  ;;  %v460_v35 = vshll.u32 %v3589_v12, 16 }
  0x59   : > { %v452_v60 = vrot.slane %v450_v20, 5  ;;  %2962 = vmatprep.mubr.msk.bf16.mxu0 %vm729_vm2, %v2586_v34  ;;  %v626_v1 = vrot.slane %v625_v56, 4  ;;  %v633_v36 = vshrl.u32 %v3600_v61, 16  ;;  %v636_v21 = vshll.u32 %v3600_v61, 16  ;;  %v1246_v20 = vld [vmem:[%s3293_s14] sm:$0xe] }
  0x5a   : > { %v621_v24 = vsel %vm3339_vm3, %v616_v51, %v620_v13  ;;  %v447_v62 = vor.u32 %v446_v59, %v443_v45  ;;  %v456_v25 = vrot.slane %v454_v10, 4  ;;  %v462_v39 = vrot.slane %v460_v35, 5 }
  0x5b   : > { %v642_v14 = vshll.u32 %v3603_v32, 16  ;;  %v631_v34 = vsel %vm3339_vm3, %v626_v1, %v630_v53  ;;  %v635_v57 = vrot.slane %v633_v36, 4  ;;  %v638_v63 = vrot.slane %v636_v21, 5 }
  0x5c   : > { %v646_v13 = vshrl.u32 %v3603_v32, 16  ;;  %v2594_v51 = vcombine.low %v621_v24, %v631_v34  ;;  %v448_v56 = vrot.slane %v447_v62, 4  ;;  %v457_v47 = vor.u32 %v456_v25, %v452_v60  ;;  %v1248_v25 = vld [vmem:[%s3293_s14 + $0x18] sm:$0xe] }
  0x5d   : > { %v644_v19 = vrot.slane %v642_v14, 5  ;;  %v639_v61 = vor.u32 %v638_v63, %v635_v57  ;;  %v652_v59 = vshll.u32 %v3611_v3, 16  ;;  %v2650_v53 = vrot.slane %v1246_v20, 9 }
  0x5e   : > { %v648_v45 = vrot.slane %v646_v13, 4  ;;  %2978 = vmatprep.mubr.msk.bf16.mxu1 %vm729_vm2, %v2594_v51  ;;  %v453_v35 = vsel %vm3339_vm3, %v448_v56, %v452_v60  ;;  %v458_v24 = vrot.slane %v457_v47, 4  ;;  %v1299_v1 = vrot.slane %v3304_v6, 5 }
  0x5f   : > { %v2616_v63 = vcombine.low %v3332_v29, %v3335_v30  ;;  %v640_v57 = vrot.slane %v639_v61, 4  ;;  %v654_v21 = vrot.slane %v652_v59, 5  ;;  %v2651_v62 = vrot.slane %v1247_v46, 9 }
  0x60   : > { %v649_v36 = vor.u32 %v648_v45, %v644_v19  ;;  %v463_v14 = vsel %vm3339_vm3, %v458_v24, %v462_v39  ;;  %v1300_v20 = vsel %vm3624_vm6, %v2650_v53, %v1299_v1  ;;  %v1301_v34 = vrot.slane %v1299_v1, 4 }
  0x61   : > { %v4774_v60 = vrot.slane %v3335_v30, 5  ;;  %v2587_v13 = vcombine.low %v453_v35, %v463_v14  ;;  %v645_v29 = vsel %vm3339_vm3, %v640_v57, %v644_v19  ;;  %v4776_v39 = vrot.slane %v3307_v7, 5  ;;  %v1249_v57 = vld [vmem:[%s3293_s14 + $0x24] sm:$0xe] }
  0x62   : > { %v650_v61 = vrot.slane %v649_v36, 4  ;;  %v4777_v45 = vrot.slane %v3346_v41, 5  ;;  %v2617_v19 = vcombine.low %v3375_v9, %v3382_v22  ;;  %v2652_v53 = vrot.slane %v1248_v25, 9 }
  0x63   : > { %v1308_v47 = vrot.slane %v4774_v60, 4  ;;  %v4775_v51 = vmov %v4774_v60  ;;  %v1303_v56 = vsel %vm3624_vm6, %v1301_v34, %v4776_v39  ;;  %2963 = vmatmul.mubr.msk.bf16.gmra.mxu0 %vm729_vm2, %v2587_v13  ;;  %v1313_v24 = vrot.slane %v3382_v22, 5 }
  0x64   : > { %v1307_v46 = vsel %vm3624_vm6, %v2651_v62, %v4775_v51  ;;  %v655_v30 = vsel %vm3339_vm3, %v650_v61, %v654_v21  ;;  %v2672_v35 = vcombine.low %v1300_v20, %v1303_v56  ;;  %v1316_v41 = vrot.slane %v3388_v26, 5  ;;  %v1252_v51 = vld [vmem:[%s3293_s14 + $0x48] sm:$0xe] }
  0x65   : > { %v1310_v59 = vsel %vm3624_vm6, %v1308_v47, %v4777_v45  ;;  %v2595_v1 = vcombine.low %v645_v29, %v655_v30  ;;  %v1314_v9 = vsel %vm3624_vm6, %v2652_v53, %v1313_v24  ;;  %v1315_v36 = vrot.slane %v1313_v24, 4  ;;  %v1251_v29 = vld [vmem:[%s3293_s14 + $0x3c] sm:$0xe] }
  0x66   : > { %v2673_v7 = vcombine.low %v1307_v46, %v1310_v59  ;;  %3026 = vmatprep.mubr.msk.bf16.mxu0 %vm729_vm2, %v2672_v35  ;;  %v1320_v62 = vrot.slane %v3426_v17, 5  ;;  %v1327_v21 = vrot.slane %v3471_v4, 5  ;;  %v4778_v22 = vcombine.low %v3301_v5, %v3304_v6  ;;  %v1254_v46 = vld [vmem:[%s3293_s14 + $0x60] sm:$0xe] }
  0x67   : > { %2979 = vmatmul.mubr.msk.bf16.gmra.mxu1 %vm729_vm2, %v2595_v1  ;;  %v1317_v26 = vsel %vm3624_vm6, %v1315_v36, %v1316_v41  ;;  %v2653_v25 = vrot.slane %v1249_v57, 9  ;;  %v1323_v34 = vrot.slane %v3430_v23, 5  ;;  %v2654_v60 = vrot.slane %v1250_v31, 9 }
  0x68   : > { %2988 = vmatprep.mubr.msk.bf16.mxu1 %vm729_vm2, %v4778_v22  ;;  %v2674_v14 = vcombine.low %v1314_v9, %v1317_v26  ;;  %v1322_v20 = vrot.slane %v1320_v62, 4  ;;  %v1329_v47 = vrot.slane %v1327_v21, 4  ;;  %v1330_v13 = vrot.slane %v3479_v38, 5 }
  0x69   : > { %v1334_v61 = vrot.slane %v3508_v28, 5  ;;  %v1341_v5 = vrot.slane %v3548_v54, 5  ;;  %v1358_v6 = vrot.slane %v3322_v16, 5  ;;  %v1321_v23 = vsel %vm3624_vm6, %v2653_v25, %v1320_v62  ;;  %v1258_v25 = vld [vmem:[%s3293_s14 + $0x90] sm:$0xe] }
  0x6a   : > { %v1324_v38 = vsel %vm3624_vm6, %v1322_v20, %v1323_v34  ;;  %v1328_v39 = vsel %vm3624_vm6, %v2654_v60, %v1327_v21  ;;  %v2655_v56 = vrot.slane %v1251_v29, 9  ;;  %v1331_v45 = vsel %vm3624_vm6, %v1329_v47, %v1330_v13  ;;  %v1259_v47 = vld [vmem:[%s3293_s14 + $0x9c] sm:$0xe] }
  0x6b   : > { %3027 = vmatmul.mubr.msk.bf16.vlgmr.msra.gmra.mxu0 %vm729_vm2, %v2673_v7  ;;  %v1336_v59 = vrot.slane %v1334_v61, 4  ;;  %v1337_v16 = vrot.slane %v3517_v48, 5  ;;  %v2656_v53 = vrot.slane %v1252_v51, 9  ;;  %v1343_v30 = vrot.slane %v1341_v5, 4  ;;  %v1253_v7 = vld [vmem:[%s3293_s14 + $0x54] sm:$0xe] }
  0x6c   : > { %3030 = vmatprep.mubr.msk.bf16.mxu0 %vm729_vm2, %v2674_v14  ;;  %v1344_v35 = vrot.slane %v3554_v37, 5  ;;  %v2658_v24 = vrot.slane %v1254_v46, 9  ;;  %v1355_v1 = vrot.slane %v3319_v15, 5  ;;  %v2618_v41 = vcombine.low %v3417_v2, %v3426_v17  ;;  %v1257_v17 = vld [vmem:[%s3293_s14 + $0x84] sm:$0xe] }
  0x6d   : > { %v2675_v57 = vcombine.low %v1321_v23, %v1324_v38  ;;  %v2676_v9 = vcombine.low %v1328_v39, %v1331_v45  ;;  %v1348_v48 = vrot.slane %v3586_v50, 5  ;;  %v2619_v37 = vcombine.low %v3466_v8, %v3471_v4  ;;  %v1260_v38 = vld [vmem:[%s3293_s14 + $0xa8] sm:$0xe] }
  0x6e   : > { %v1357_v36 = vrot.slane %v1355_v1, 4  ;;  %v2620_v62 = vcombine.low %v3503_v18, %v3508_v28  ;;  %v2657_v2 = vrot.slane %v1253_v7, 9  ;;  %v1338_v31 = vsel %vm3624_vm6, %v1336_v59, %v1337_v16  ;;  %v1261_v7 = vld [vmem:[%s3293_s14 + $0xb4] sm:$0xe] }
  0x6f   : > { %2989 = vmatmul.mubr.msk.bf16.vlgmr.msra.gmra.mxu1 %vm729_vm2, %v2616_v63  ;;  %v3705_v63 = vsel %vm3624_vm6, %v2658_v24, %v1355_v1  ;;  %v1342_v21 = vsel %vm3624_vm6, %v2656_v53, %v1341_v5  ;;  %v1345_v22 = vsel %vm3624_vm6, %v1343_v30, %v1344_v35  ;;  %v2621_v4 = vcombine.low %v3538_v44, %v3548_v54  ;;  %v4779_v30 = vld [vmem:[#allocation11_spill] sm:$0xff] }
  0x70   : > { %2992 = vmatprep.mubr.msk.bf16.mxu1 %vm729_vm2, %v2617_v19  ;;  %v1335_v19 = vsel %vm3624_vm6, %v2655_v56, %v1334_v61  ;;  %v3722_v8 = vsel %vm3624_vm6, %v1357_v36, %v1358_v6  ;;  %v1351_v18 = vrot.slane %v3589_v12, 5  ;;  %v2626_v26 = vcombine.low %v3439_v33, %v3449_v42 }
  0x71   : > { %v2680_v28 = vcombine.low %v3705_v63, %v3722_v8  ;;  %v1350_v14 = vrot.slane %v1348_v48, 4  ;;  %v2661_v20 = vrot.slane %v1257_v17, 9  ;;  %v1376_v34 = vrot.slane %v3449_v42, 5  ;;  %v4787_v8 = vld [vmem:[#allocation6_spill] sm:$0xff] }
  0x72   : > { %v1379_v60 = vrot.slane %v3458_v55, 5  ;;  %v2677_v44 = vcombine.low %v1335_v19, %v1338_v31  ;;  %v2678_v54 = vcombine.low %v1342_v21, %v1345_v22  ;;  %v1349_v12 = vsel %vm3624_vm6, %v2657_v2, %v1348_v48  ;;  %v1255_v21 = vld [vmem:[%s3293_s14 + $0x6c] sm:$0xe]  ;;  %v4782_v22 = vld [vmem:[#allocation9_spill] sm:$0xff] }
  0x73   : > { %3031 = vmatmul.mubr.msk.bf16.gmra.mxu0 %vm729_vm2, %v2675_v57  ;;  %v2627_v13 = vcombine.low %v3484_v43, %v3489_v49  ;;  %v3744_v29 = vsel %vm3624_vm6, %v2661_v20, %v1376_v34  ;;  %v1378_v61 = vrot.slane %v1376_v34, 4  ;;  %v2662_v51 = vrot.slane %v1258_v25, 9  ;;  %v4780_v57 = vld [vmem:[#allocation12_spill] sm:$0xff] }
  0x74   : > { %3034 = vmatprep.mubr.msk.bf16.mxu0 %vm729_vm2, %v2676_v9  ;;  %v1383_v55 = vrot.slane %v3489_v49, 5  ;;  %v1362_v5 = vrot.slane %v3361_v58, 5  ;;  %v1386_v6 = vrot.slane %v3498_v11, 5  ;;  %v2628_v46 = vcombine.low %v3522_v52, %v3529_v27  ;;  %v1256_v20 = vld [vmem:[%s3293_s14 + $0x78] sm:$0xe] }
  0x75   : > { %v2663_v23 = vrot.slane %v1259_v47, 9  ;;  %v1352_v39 = vsel %vm3624_vm6, %v1350_v14, %v1351_v18  ;;  %v1380_v56 = vsel %vm3624_vm6, %v1378_v61, %v1379_v60  ;;  %v1390_v53 = vrot.slane %v3529_v27, 5 }
  0x76   : > { %v1384_v45 = vsel %vm3624_vm6, %v2662_v51, %v1383_v55  ;;  %v1385_v59 = vrot.slane %v1383_v55, 4  ;;  %v2683_v16 = vcombine.low %v3744_v29, %v1380_v56  ;;  %v1393_v11 = vrot.slane %v3535_v40, 5  ;;  %v4783_v51 = vld [vmem:[#allocation7_spill] sm:$0xff] }
  0x77   : > { %2993 = vmatmul.mubr.msk.bf16.gmra.mxu1 %vm729_vm2, %v2618_v41  ;;  %v2629_v35 = vcombine.low %v4779_v30, %v3567_v0  ;;  %v2664_v1 = vrot.slane %v1260_v38, 9  ;;  %v1397_v41 = vrot.slane %v3567_v0, 5  ;;  %v1400_v9 = vrot.slane %v4780_v57, 5 }
  0x78   : > { %2996 = vmatprep.mubr.msk.bf16.mxu1 %vm729_vm2, %v2619_v37  ;;  %v1387_v24 = vsel %vm3624_vm6, %v1385_v59, %v1386_v6  ;;  %v1391_v40 = vsel %vm3624_vm6, %v2663_v23, %v1390_v53  ;;  %v1392_v36 = vrot.slane %v1390_v53, 4  ;;  %v4781_v37 = vld [vmem:[#allocation14_spill] sm:$0xff]  ;;  %v2665_v0 = vrot.slane %v1261_v7, 9 }
  0x79   : > { %v2684_v48 = vcombine.low %v1384_v45, %v1387_v24  ;;  %v2630_v19 = vcombine.low %v4781_v37, %v3603_v32  ;;  %v1398_v2 = vsel %vm3624_vm6, %v2664_v1, %v1397_v41  ;;  %v1399_v17 = vrot.slane %v1397_v41, 4  ;;  %v4784_v23 = vld [vmem:[#allocation10_spill] sm:$0xff]  ;;  %v4785_v45 = vld [vmem:[#allocation13_spill] sm:$0xff] }
  0x7a   : > { %v1404_v31 = vrot.slane %v3603_v32, 5  ;;  %v1369_v18 = vrot.slane %v4782_v22, 5  ;;  %v1394_v25 = vsel %vm3624_vm6, %v1392_v36, %v1393_v11  ;;  %v1407_v14 = vrot.slane %v3611_v3, 5 }
  0x7b   : > { %3035 = vmatmul.mubr.msk.bf16.gmra.mxu0 %vm729_vm2, %v2677_v44  ;;  %v2685_v34 = vcombine.low %v1391_v40, %v1394_v25  ;;  %v1401_v60 = vsel %vm3624_vm6, %v1399_v17, %v1400_v9  ;;  %v2679_v32 = vcombine.low %v1349_v12, %v1352_v39  ;;  %v2659_v29 = vrot.slane %v1255_v21, 9 }
  0x7c   : > { %3038 = vmatprep.mubr.msk.bf16.mxu0 %vm729_vm2, %v2678_v54  ;;  %v1405_v47 = vsel %vm3624_vm6, %v2665_v0, %v1404_v31  ;;  %v1406_v44 = vrot.slane %v1404_v31, 4  ;;  %v2686_v54 = vcombine.low %v1398_v2, %v1401_v60  ;;  %v1364_v61 = vrot.slane %v1362_v5, 4 }
  0x7d   : > { %v1365_v55 = vrot.slane %v4783_v51, 5  ;;  %v1371_v6 = vrot.slane %v1369_v18, 4  ;;  %v1372_v38 = vrot.slane %v4784_v23, 5  ;;  %v2622_v59 = vcombine.low %v4785_v45, %v3586_v50 }
  0x7e   : > { %v1408_v3 = vsel %vm3624_vm6, %v1406_v44, %v1407_v14  ;;  %v1363_v39 = vsel %vm3624_vm6, %v2659_v29, %v1362_v5  ;;  %v4788_v5 = vld [vmem:[#allocation8_spill] sm:$0xff]  ;;  %v3844_v43 = vstv %s2740_s9  ;;  %s3197_s9 = smov [#allocation2]  }
  0x7f   : > { %2997 = vmatmul.mubr.msk.bf16.gmra.mxu1 %vm729_vm2, %v2620_v62  ;;  %v2660_v62 = vrot.slane %v1256_v20, 9  ;;  %v2687_v56 = vcombine.low %v1405_v47, %v1408_v3  ;;  %v1366_v53 = vsel %vm3624_vm6, %v1364_v61, %v1365_v55  ;;  %v1373_v50 = vsel %vm3624_vm6, %v1371_v6, %v1372_v38  ;;  %s3137_s10 = sshll.u32 %s3197_s9, 4  ;;  %s3138_s10 = int_to_ptr.vmem [resolvable:$false] %s3137_s10 }
  0x80   : > { %3000 = vmatprep.mubr.msk.bf16.mxu1 %vm729_vm2, %v2621_v4  ;;  %v4786_v4 = vld [vmem:[#allocation5_spill] sm:$0xff]  ;;  %v2625_v30 = vcombine.low %v4788_v5, %v4782_v22  ;;  %s3139_s19 = scalar_lea.vmem %s3138_s10, 32  ;;  %p3140_p1 = scmp.lt.s32.totalorder %s2487_s28, %s3138_s10 }
  0x81   : > { %v2623_v12 = vcombine.low %v4786_v4, %v3319_v15  ;;  %v1370_v11 = vsel %vm3624_vm6, %v2660_v62, %v1369_v18  ;;  %v2681_v15 = vcombine.low %v1363_v39, %v1366_v53  ;;  %p3141_p2 = scmp.lt.s32.totalorder %s3139_s19, %s3133_s8 }
  0x82   : > { %v2682_v63 = vcombine.low %v1370_v11, %v1373_v50 }
  0x83   : > { %3039 = vmatmul.mubr.msk.bf16.gmra.mxu0 %vm729_vm2, %v2679_v32  ;;  %p3142_p3 = por %p3141_p2, %p3140_p1 }
  0x84   : > { %3042 = vmatprep.mubr.msk.bf16.mxu0 %vm729_vm2, %v2680_v28  ;;  %v2624_v28 = vcombine.low %v4787_v8, %v3361_v58  ;;  %v1988_v58 = vlaneseq }
  0x85   : > { %p3143_p4 = pnand %p3142_p3, %p3136_p0 }
  0x86   : > { %v3840_v33 = vshrl.u32 %v1988_v58, 7 }
  0x87   : > { %3001 = vmatmul.mubr.msk.bf16.gmra.mxu1 %vm729_vm2, %v2622_v59 }
  0x88   : > { %3004 = vmatprep.mubr.msk.bf16.mxu1 %vm729_vm2, %v2623_v12  ;;  %v1990_v42 = vadd.s32 8, %v3840_v33  ;;  %v1991_v49 = vadd.s32 16, %v3840_v33  ;;  %v2022_v52 = vadd.s32 %v3844_v43, %v3840_v33  ;;  %v1992_v10 = vadd.s32 24, %v3840_v33 }
  0x89   : > { %v1993_v7 = vadd.s32 32, %v3840_v33  ;;  %v1994_v41 = vadd.s32 40, %v3840_v33  ;;  %v1995_v40 = vadd.s32 48, %v3840_v33  ;;  %v1996_v2 = vadd.s32 56, %v3840_v33 }
  0x8a   : > { %v2023_v27 = vadd.s32 %v3844_v43, %v1990_v42  ;;  %vm2054_vm7 = vcmp.lt.s32.totalorder %v2022_v52, 512  ;;  %v1997_v22 = vadd.s32 64, %v3840_v33  ;;  %v1998_v14 = vadd.s32 72, %v3840_v33 }
  0x8b   : > { %3043 = vmatmul.mubr.msk.bf16.gmra.mxu0 %vm729_vm2, %v2681_v15  ;;  %v2026_v57 = vadd.s32 %v3844_v43, %v1993_v7  ;;  %v2027_v36 = vadd.s32 %v3844_v43, %v1994_v41  ;;  %v2028_v17 = vadd.s32 %v3844_v43, %v1995_v40  ;;  %v2029_v21 = vadd.s32 %v3844_v43, %v1996_v2 }
  0x8c   : > { %3046 = vmatprep.mubr.msk.bf16.mxu0 %vm729_vm2, %v2682_v63  ;;  %vm2055_vm8 = vcmp.lt.s32.totalorder %v2023_v27, 512  ;;  %v2030_v20 = vadd.s32 %v3844_v43, %v1997_v22  ;;  %v1999_v47 = vadd.s32 80, %v3840_v33  ;;  %v2031_v44 = vadd.s32 %v3844_v43, %v1998_v14 }
  0x8d   : > { %vm2058_vm11 = vcmp.lt.s32.totalorder %v2026_v57, 512  ;;  %vm2059_vm12 = vcmp.lt.s32.totalorder %v2027_v36, 512  ;;  %vm2060_vm13 = vcmp.lt.s32.totalorder %v2028_v17, 512  ;;  %vm2061_vm14 = vcmp.lt.s32.totalorder %v2029_v21, 512 }
  0x8e   : > { %vm2062_vm15 = vcmp.lt.s32.totalorder %v2030_v20, 512  ;;  %v2000_v61 = vadd.s32 88, %v3840_v33  ;;  %v2032_v51 = vadd.s32 %v3844_v43, %v1999_v47  ;;  %vm2063_vm0 = vcmp.lt.s32.totalorder %v2031_v44, 512 }
  0x8f   : > { %3005 = vmatmul.mubr.msk.bf16.gmra.mxu1 %vm729_vm2, %v2624_v28  ;;  %v2001_v38 = vadd.s32 96, %v3840_v33  ;;  %v2002_v12 = vadd.s32 104, %v3840_v33  ;;  %v2003_v63 = vadd.s32 112, %v3840_v33  ;;  %v2004_v42 = vadd.s32 120, %v3840_v33 }
  0x90   : > { %3008 = vmatprep.mubr.msk.bf16.mxu1 %vm729_vm2, %v2625_v30  ;;  %v2033_v23 = vadd.s32 %v3844_v43, %v2000_v61  ;;  %vm2064_vm1 = vcmp.lt.s32.totalorder %v2032_v51, 512  ;;  %v2005_v7 = vadd.s32 128, %v3840_v33  ;;  %v2006_v36 = vadd.s32 136, %v3840_v33 }
  0x91   : > { %v2034_v39 = vadd.s32 %v3844_v43, %v2001_v38  ;;  %v2035_v8 = vadd.s32 %v3844_v43, %v2002_v12  ;;  %v2007_v21 = vadd.s32 144, %v3840_v33  ;;  %v2008_v47 = vadd.s32 152, %v3840_v33 }
  0x92   : > { %v2038_v40 = vadd.s32 %v3844_v43, %v2005_v7  ;;  %v2039_v22 = vadd.s32 %v3844_v43, %v2006_v36 }
  0x93   : > { %3047 = vmatmul.mubr.msk.bf16.gmra.mxu0 %vm729_vm2, %v2683_v16  ;;  %vm2066_vm3 = vcmp.lt.s32.totalorder %v2034_v39, 512  ;;  %vm2067_vm4 = vcmp.lt.s32.totalorder %v2035_v8, 512  ;;  %v2040_v44 = vadd.s32 %v3844_v43, %v2007_v21  ;;  %v2041_v38 = vadd.s32 %v3844_v43, %v2008_v47 }
  0x94   : > { %3050 = vmatprep.mubr.msk.bf16.mxu0 %vm729_vm2, %v2684_v48 }
  0x97   : > { %3009 = vmatmul.mubr.msk.bf16.gmra.mxu1 %vm729_vm2, %v2626_v26  ;;  %v2024_v26 = vadd.s32 %v3844_v43, %v1991_v49  ;;  %v2036_v49 = vadd.s32 %v3844_v43, %v2003_v63  ;;  %v2010_v63 = vadd.s32 168, %v3840_v33 }
  0x98   : > { %3012 = vmatprep.mubr.msk.bf16.mxu1 %vm729_vm2, %v2627_v13  ;;  %v4709_v13 = vmov 0.0  }
  0x99   : > { %v3856_v16 = vsel %vm2055_vm8, 1.0, %v4709_v13  ;;  %vm2056_vm9 = vcmp.lt.s32.totalorder %v2024_v26, 512  ;;  %v3881_v31 = vsel %vm2059_vm12, 1.0, %v4709_v13  ;;  %v3887_v25 = vsel %vm2060_vm13, 1.0, %v4709_v13 }
  0x9a   : > { %v3863_v1 = vsel %vm2056_vm9, 1.0, %v4709_v13  ;;  %v3893_v60 = vsel %vm2061_vm14, 1.0, %v4709_v13  ;;  %v3901_v29 = vsel %vm2062_vm15, 1.0, %v4709_v13  ;;  %v3911_v6 = vsel %vm2063_vm0, 1.0, %v4709_v13 }
  0x9b   : > { %3051 = vmatmul.mubr.msk.bf16.gmra.mxu0 %vm729_vm2, %v2685_v34  ;;  %v3921_v4 = vsel %vm2064_vm1, 1.0, %v4709_v13  ;;  %v3941_v58 = vsel %vm2066_vm3, 1.0, %v4709_v13  ;;  %v3951_v26 = vsel %vm2067_vm4, 1.0, %v4709_v13  ;;  %vm2068_vm5 = vcmp.lt.s32.totalorder %v2036_v49, 512 }
  0x9c   : > { %3054 = vmatprep.mubr.msk.bf16.mxu0 %vm729_vm2, %v2686_v54  ;;  %4790 = vst [vmem:[#allocation12_spill] sm:$0xff] %v3941_v58  ;;  %4791 = vst [vmem:[#allocation14_spill] sm:$0xff] %v3951_v26  ;;  %vm2071_vm8 = vcmp.lt.s32.totalorder %v2039_v22, 512  ;;  %vm2072_vm9 = vcmp.lt.s32.totalorder %v2040_v44, 512  ;;  %v2043_v7 = vadd.s32 %v3844_v43, %v2010_v63  ;;  %v2012_v22 = vadd.s32 184, %v3840_v33 }
  0x9d   : > { %v2013_v63 = vadd.s32 192, %v3840_v33  ;;  %vm1890_vm0 = vcmask 60416   ;;  %vm2220_vm4 = vcmask 64512  }
  0x9e   : > { %vm2075_vm12 = vcmp.lt.s32.totalorder %v2043_v7, 512 }
  0x9f   : > { %3013 = vmatmul.mubr.msk.bf16.gmra.mxu1 %vm729_vm2, %v2628_v46  ;;  %v3853_v46 = vsel %vm2054_vm7, 1.0, %v4709_v13  ;;  %vm2070_vm7 = vcmp.lt.s32.totalorder %v2038_v40, 512 }
  0xa0   : > { %3016 = vmatprep.mubr.msk.bf16.mxu1 %vm729_vm2, %v2629_v35  ;;  %v2025_v35 = vadd.s32 %v3844_v43, %v1992_v10  ;;  %v2150_v24 = vadd.f32 %v3856_v16, %v3853_v46 }
  0xa2   : > { %vm2057_vm10 = vcmp.lt.s32.totalorder %v2025_v35, 512  ;;  %v2151_v9 = vadd.f32 %v3863_v1, %v2150_v24  ;;  %v2037_v35 = vadd.s32 %v3844_v43, %v2004_v42 }
  0xa3   : > { %3055 = vmatmul.mubr.msk.bf16.gmra.mxu0 %vm729_vm2, %v2687_v56  ;;  %v3869_v48 = vsel %vm2057_vm10, 1.0, %v4709_v13  ;;  %vm2073_vm10 = vcmp.lt.s32.totalorder %v2041_v38, 512  ;;  %v4036_v38 = vsel %vm2075_vm12, 1.0, %v4709_v13 }
  0xa4   : > { %4789 = vst [vmem:[#allocation11_spill] sm:$0xff] %v3869_v48  ;;  %v2152_v37 = vadd.f32 %v3869_v48, %v2151_v9  ;;  %v3961_v9 = vsel %vm2068_vm5, 1.0, %v4709_v13  ;;  %vm2069_vm6 = vcmp.lt.s32.totalorder %v2037_v35, 512  ;;  %v2011_v35 = vadd.s32 176, %v3840_v33  ;;  %4802 = vst [vmem:[#allocation18_spill] sm:$0xff] %v4036_v38 }
  0xa7   : > { %3017 = vmatmul.mubr.msk.bf16.gmra.mxu1 %vm729_vm2, %v2630_v19  ;;  %v3875_v19 = vsel %vm2058_vm11, 1.0, %v4709_v13  ;;  %vm2065_vm2 = vcmp.lt.s32.totalorder %v2033_v23, 512  ;;  %v2009_v23 = vadd.s32 160, %v3840_v33 }
  0xa8   : > { %v2153_v0 = vadd.f32 %v3875_v19, %v2152_v37  ;;  %v3931_v15 = vsel %vm2065_vm2, 1.0, %v4709_v13 }
  0xa9   : > { %v2042_v8 = vadd.s32 %v3844_v43, %v2009_v23 }
  0xaa   : > { %v2154_v18 = vadd.f32 %v3881_v31, %v2153_v0  ;;  %v3971_v0 = vsel %vm2069_vm6, 1.0, %v4709_v13 }
  0xab   : > { %vm2074_vm11 = vcmp.lt.s32.totalorder %v2042_v8, 512  ;;  %v2045_v8 = vadd.s32 %v3844_v43, %v2012_v22 }
  0xac   : > { %v2155_v34 = vadd.f32 %v3887_v25, %v2154_v18 }
  0xad   : > { %vm2077_vm14 = vcmp.lt.s32.totalorder %v2045_v8, 512 }
  0xae   : > { %v2156_v54 = vadd.f32 %v3893_v60, %v2155_v34  ;;  %v3981_v34 = vsel %vm2070_vm7, 1.0, %v4709_v13 }
  0xaf   : > { %4792 = vst [vmem:[#allocation9_spill] sm:$0xff] %v3981_v34 }
  0xb0   : > { %v2157_v62 = vadd.f32 %v3901_v29, %v2156_v54 }
  0xb2   : > { %v2158_v59 = vadd.f32 %v3911_v6, %v2157_v62  ;;  %v3991_v62 = vsel %vm2071_vm8, 1.0, %v4709_v13 }
  0xb3   : > { %4793 = vst [vmem:[#allocation7_spill] sm:$0xff] %v3991_v62 }
  0xb4   : > { %v2159_v50 = vadd.f32 %v3921_v4, %v2158_v59 }
  0xb6   : > { %v2160_v30 = vadd.f32 %v3931_v15, %v2159_v50  ;;  %v4001_v50 = vsel %vm2072_vm9, 1.0, %v4709_v13  ;;  %vm2462_vm9 = vcmask 122880  }
  0xb7   : > { %4795 = vst [vmem:[#allocation13_spill] sm:$0xff] %v4001_v50 }
  0xb8   : > { %v2161_v10 = vadd.f32 %v3941_v58, %v2160_v30 }
  0xba   : > { %v2162_v57 = vadd.f32 %v3951_v26, %v2161_v10  ;;  %v4011_v10 = vsel %vm2073_vm10, 1.0, %v4709_v13 }
  0xbb   : > { %4797 = vst [vmem:[#allocation6_spill] sm:$0xff] %v4011_v10 }
  0xbc   : > { %v2163_v17 = vadd.f32 %v3961_v9, %v2162_v57 }
  0xbe   : > { %v2164_v20 = vadd.f32 %v3971_v0, %v2163_v17  ;;  %v4021_v17 = vsel %vm2074_vm11, 1.0, %v4709_v13 }
  0xbf   : > { %4799 = vst [vmem:[#allocation15_spill] sm:$0xff] %v4021_v17 }
  0xc0   : > { %v2165_v51 = vadd.f32 %v3981_v34, %v2164_v20  ;;  %v2044_v20 = vadd.s32 %v3844_v43, %v2011_v35  ;;  %v4806_v34 = vmov 0.0  }
  0xc2   : > { %v2166_v39 = vadd.f32 %v3991_v62, %v2165_v51  ;;  %vm2076_vm13 = vcmp.lt.s32.totalorder %v2044_v20, 512  ;;  %v2046_v62 = vadd.s32 %v3844_v43, %v2013_v63 }
  0xc4   : > { %v2167_v49 = vadd.f32 %v4001_v50, %v2166_v39  ;;  %vm2078_vm15 = vcmp.lt.s32.totalorder %v2046_v62, 512 }
  0xc6   : > { %v2168_v36 = vadd.f32 %v4011_v10, %v2167_v49 }
  0xc8   : > { %v2169_v51 = vadd.f32 %v4021_v17, %v2168_v36  ;;  %v2014_v36 = vadd.s32 200, %v3840_v33  ;;  %v4049_v17 = vsel %vm2076_vm13, 1.0, %v4709_v13  ;;  %v2015_v13 = vadd.s32 208, %v3840_v33 }
  0xc9   : > { %4805 = vst [vmem:[#allocation21_spill] sm:$0xff] %v4049_v17 }
  0xca   : > { %v2170_v7 = vadd.f32 %v4036_v38, %v2169_v51  ;;  %v4057_v51 = vld [vmem:[%s4685_s2] ss:$0 sm:$0xff]  ;;  %v2048_v62 = vadd.s32 %v3844_v43, %v2015_v13 }
  0xcc   : > { %vm2080_vm2 = vcmp.lt.s32.totalorder %v2048_v62, 512 }
  0xef   : > { %v3897_v32 = vpop.f32.mrf.mxu0 }
  0xf1   : > { %v3907_v3 = vpop.f32.mrf.mxu0 }
  0xf3   : > { %v3917_v45 = vpop.f32.mrf.mxu0 }
  0xf4   : > { %v3905_v55 = vpop.f32.mrf.mxu1 }
  0xf5   : > { %v3927_v11 = vpop.f32.mrf.mxu0 }
  0xf6   : > { %v3915_v56 = vpop.f32.mrf.mxu1 }
  0xf8   : > { %v3925_v53 = vpop.f32.mrf.mxu1 }
  0xfa   : > { %v3935_v28 = vpop.f32.mrf.mxu1 }
 0x100   : > { %v3937_v5 = vpop.f32.mrf.mxu0 }
 0x102   : > { %v3947_v27 = vpop.f32.mrf.mxu0 }
 0x104   : > { %v3945_v52 = vpop.f32.mrf.mxu1  ;;  %v3957_v41 = vpop.f32.mrf.mxu0 }
 0x106   : > { %v3955_v24 = vpop.f32.mrf.mxu1  ;;  %v3967_v2 = vpop.f32.mrf.mxu0 }
 0x108   : > { %v3965_v37 = vpop.f32.mrf.mxu1 }
 0x10a   : > { %v3975_v18 = vpop.f32.mrf.mxu1 }
 0x112   : > { %v3977_v14 = vpop.f32.mrf.mxu0 }
 0x114   : > { %v3987_v61 = vpop.f32.mrf.mxu0 }
 0x116   : > { %v3985_v54 = vpop.f32.mrf.mxu1  ;;  %v3997_v12 = vpop.f32.mrf.mxu0 }
 0x118   : > { %v3995_v59 = vpop.f32.mrf.mxu1  ;;  %v4007_v42 = vpop.f32.mrf.mxu0 }
 0x119   : > { %4794 = vst [vmem:[#allocation10_spill] sm:$0xff] %v3995_v59 }
 0x11a   : > { %v4005_v30 = vpop.f32.mrf.mxu1 }
 0x11b   : > { %4796 = vst [vmem:[#allocation5_spill] sm:$0xff] %v4005_v30 }
 0x11c   : > { %v4015_v57 = vpop.f32.mrf.mxu1 }
 0x11d   : > { %4798 = vst [vmem:[#allocation8_spill] sm:$0xff] %v4015_v57 }
 0x123   : > { %v4017_v40 = vpop.f32.mrf.mxu0 }
 0x125   : > { %v4023_v21 = vpop.f32.mrf.mxu0 }
 0x127   : > { %v4027_v47 = vpop.f32.mrf.mxu1  ;;  %v4030_v44 = vpop.f32.mrf.mxu0 }
 0x128   : > { %4800 = vst [vmem:[#allocation16_spill] sm:$0xff] %v4027_v47  ;;  %v4062_v47 = vsel %vm2077_vm14, 1.0, %v4806_v34 }
 0x129   : > { %v4033_v23 = vpop.f32.mrf.mxu1  ;;  %v4038_v39 = vpop.f32.mrf.mxu0  ;;  %4807 = vst [vmem:[#allocation22_spill] sm:$0xff] %v4062_v47 }
 0x12a   : > { %4801 = vst [vmem:[#allocation17_spill] sm:$0xff] %v4033_v23 }
 0x12b   : > { %v4042_v49 = vpop.f32.mrf.mxu1  ;;  %v3028_v35 = vpop.f32.mrf.mxu0 }
 0x12c   : > { %4803 = vst [vmem:[#allocation19_spill] sm:$0xff] %v4042_v49  ;;  %v2171_v49 = vadd.f32 %v4049_v17, %v2170_v7 }
 0x12d   : > { %v4045_v10 = vpop.f32.mrf.mxu1  ;;  %v1564_v50 = vpop.f32.mrf.mxu0 }
 0x12e   : > { %4804 = vst [vmem:[#allocation20_spill] sm:$0xff] %v4045_v10  ;;  %v2047_v10 = vadd.s32 %v3844_v43, %v2014_v36  ;;  %v2172_v26 = vadd.f32 %v4062_v47, %v2171_v49 }
 0x12f   : > { %v2990_v23 = vpop.f32.mrf.mxu1  ;;  %v3029_v20 = vpop.f32.mrf.mxu0 }
 0x130   : > { %v1128_v22 = vadd.f32 %v2990_v23, %v3897_v32  ;;  %vm2079_vm1 = vcmp.lt.s32.totalorder %v2047_v10, 512 }
 0x131   : > { %v1119_v38 = vpop.f32.mrf.mxu1  ;;  %v1567_v23 = vpop.f32.mrf.mxu0 }
 0x132   : > { %v1693_v63 = vadd.f32 %v3028_v35, %v1128_v22  ;;  %v1120_v32 = vadd.f32 %v1119_v38, %v3907_v3  ;;  %v2016_v3 = vadd.s32 216, %v3840_v33  ;;  %v4076_v38 = vsel %vm2078_vm15, 1.0, %v4806_v34 }
 0x133   : > { %v2991_v8 = vpop.f32.mrf.mxu1  ;;  %v3032_v30 = vpop.f32.mrf.mxu0 }
 0x134   : > { %v1732_v7 = vadd.f32 %v4057_v51, %v1693_v63  ;;  %v1691_v17 = vadd.f32 %v1564_v50, %v1120_v32  ;;  %v1131_v57 = vadd.f32 %v2991_v8, %v3917_v45 }
 0x135   : > { %v1122_v35 = vpop.f32.mrf.mxu1  ;;  %v1580_v22 = vpop.f32.mrf.mxu0 }
 0x136   : > { %v2778_v50 = vpack.c.bf16 %v1732_v7, %v1732_v7  ;;  %v1730_v45 = vadd.f32 %v4057_v51, %v1691_v17  ;;  %v1694_v49 = vadd.f32 %v3029_v20, %v1131_v57  ;;  %v1123_v36 = vadd.f32 %v1122_v35, %v3927_v11 }
 0x137   : > { %v2994_v63 = vpop.f32.mrf.mxu1  ;;  %v3033_v58 = vpop.f32.mrf.mxu0  ;;  %v2049_v7 = vadd.s32 %v3844_v43, %v2016_v3  ;;  %v4087_v57 = vsel %vm2079_vm1, 1.0, %v4806_v34  ;;  %v2173_v11 = vadd.f32 %v4076_v38, %v2172_v26  ;;  %v2017_v3 = vadd.s32 224, %v3840_v33 }
 0x138   : > { %1893 = vst.msk [vmem:[%s4071_s20 + $0x8] sm:$0xf] %vm1890_vm0, %v2778_v50  ;;  %v2776_v32 = vpack.c.bf16 %v1730_v45, %v1730_v45  ;;  %v1733_v8 = vadd.f32 %v4057_v51, %v1694_v49  ;;  %v1692_v47 = vadd.f32 %v1567_v23, %v1123_v36  ;;  %v1144_v13 = vadd.f32 %v2994_v63, %v3937_v5 }
 0x139   : > { %v1135_v59 = vpop.f32.mrf.mxu1  ;;  %v1583_v35 = vpop.f32.mrf.mxu0  ;;  %vm2081_vm3 = vcmp.lt.s32.totalorder %v2049_v7, 512  ;;  %v2019_v7 = vadd.s32 240, %v3840_v33 }
 0x13a   : > { %1891 = vst.msk [vmem:[%s4071_s20] sm:$0xf] %vm1890_vm0, %v2776_v32  ;;  %v2779_v17 = vpack.c.bf16 %v1733_v8, %v1733_v8  ;;  %v1731_v20 = vadd.f32 %v4057_v51, %v1692_v47  ;;  %v1697_v23 = vadd.f32 %v3032_v30, %v1144_v13  ;;  %v1136_v5 = vadd.f32 %v1135_v59, %v3947_v27 }
 0x13b   : > { %v2995_v50 = vpop.f32.mrf.mxu1  ;;  %v3036_v36 = vpop.f32.mrf.mxu0  ;;  %v4101_v30 = vsel %vm2080_vm2, 1.0, %v4806_v34  ;;  %v2174_v27 = vadd.f32 %v4087_v57, %v2173_v11  ;;  %v2050_v13 = vadd.s32 %v3844_v43, %v2017_v3 }
 0x13c   : > { %1894 = vst.msk [vmem:[%s4071_s20 + $0xc] sm:$0xf] %vm1890_vm0, %v2779_v17  ;;  %v2777_v10 = vpack.c.bf16 %v1731_v20, %v1731_v20  ;;  %v1736_v45 = vadd.f32 %v4057_v51, %v1697_v23  ;;  %v1695_v26 = vadd.f32 %v1580_v22, %v1136_v5  ;;  %v1147_v49 = vadd.f32 %v2995_v50, %v3957_v41 }
 0x13d   : > { %v1138_v63 = vpop.f32.mrf.mxu1  ;;  %v1596_v8 = vpop.f32.mrf.mxu0  ;;  %v2018_v50 = vadd.s32 232, %v3840_v33  ;;  %vm2082_vm5 = vcmp.lt.s32.totalorder %v2050_v13, 512 }
 0x13e   : > { %1892 = vst.msk [vmem:[%s4071_s20 + $0x4] sm:$0xf] %vm1890_vm0, %v2777_v10  ;;  %v2782_v59 = vpack.c.bf16 %v1736_v45, %v1736_v45  ;;  %v1734_v47 = vadd.f32 %v4057_v51, %v1695_v26  ;;  %v1698_v32 = vadd.f32 %v3033_v58, %v1147_v49  ;;  %v1139_v22 = vadd.f32 %v1138_v63, %v3967_v2 }
 0x13f   : > { %v2998_v41 = vpop.f32.mrf.mxu1  ;;  %v3037_v23 = vpop.f32.mrf.mxu0  ;;  %v4116_v58 = vsel %vm2081_vm3, 1.0, %v4806_v34  ;;  %v2175_v2 = vadd.f32 %v4101_v30, %v2174_v27 }
 0x140   : > { %1897 = vst.msk [vmem:[%s4071_s20 + $0x18] sm:$0xf] %vm1890_vm0, %v2782_v59  ;;  %v2780_v62 = vpack.c.bf16 %v1734_v47, %v1734_v47  ;;  %v1737_v17 = vadd.f32 %v4057_v51, %v1698_v32  ;;  %v1696_v11 = vadd.f32 %v1583_v35, %v1139_v22  ;;  %v1160_v20 = vadd.f32 %v2998_v41, %v3977_v14 }
 0x141   : > { %v1151_v5 = vpop.f32.mrf.mxu1  ;;  %4808 = vst [vmem:[#allocation23_spill] sm:$0xff] %v4116_v58  ;;  %v1599_v45 = vpop.f32.mrf.mxu0 }
 0x142   : > { %1895 = vst.msk [vmem:[%s4071_s20 + $0x10] sm:$0xf] %vm1890_vm0, %v2780_v62  ;;  %v2783_v3 = vpack.c.bf16 %v1737_v17, %v1737_v17  ;;  %v1735_v10 = vadd.f32 %v4057_v51, %v1696_v11  ;;  %v1701_v35 = vadd.f32 %v3036_v36, %v1160_v20  ;;  %v1152_v14 = vadd.f32 %v1151_v5, %v3987_v61 }
 0x143   : > { %v4124_v26 = vld [vmem:[%s4071_s20 + $0x8] sm:$0xff]   ;;  %v2999_v49 = vpop.f32.mrf.mxu1  ;;  %v3040_v47 = vpop.f32.mrf.mxu0  ;;  %v4137_v62 = vadd.s32 %v3844_v43, %v2018_v50  ;;  %v4140_v17 = vadd.f32 %v4116_v58, %v2175_v2 }
 0x144   : > { %v4722_v63 = vunpack.c.l.bf16 %v4124_v26  ;;  %v4721_v27 = vunpack.c.h.bf16 %v4124_v26  ;;  %1898 = vst.msk [vmem:[%s4071_s20 + $0x1c] sm:$0xf] %vm1890_vm0, %v2783_v3  ;;  %v2781_v59 = vpack.c.bf16 %v1735_v10, %v1735_v10  ;;  %v1740_v36 = vadd.f32 %v4057_v51, %v1701_v35 }
 0x145   : > { %v4133_v61 = vld [vmem:[%s4071_s20] sm:$0xff]   ;;  %v1699_v32 = vadd.f32 %v1596_v8, %v1152_v14  ;;  %v1163_v22 = vadd.f32 %v2999_v49, %v3997_v12  ;;  %v1154_v41 = vpop.f32.mrf.mxu1  ;;  %v1612_v8 = vpop.f32.mrf.mxu0  ;;  %v4151_v12 = vsel %vm2082_vm5, 1.0, %v4806_v34  ;;  %vm2083_vm6 = vcmp.lt.s32.totalorder %v4137_v62, 512 }
 0x146   : > { %v2190_v11 = vmul.f32 %v4722_v63, %v3863_v1  ;;  %v4724_v20 = vunpack.c.l.bf16 %v4133_v61  ;;  %v4723_v5 = vunpack.c.h.bf16 %v4133_v61  ;;  %1896 = vst.msk [vmem:[%s4071_s20 + $0x14] sm:$0xf] %vm1890_vm0, %v2781_v59  ;;  %4809 = vst [vmem:[#allocation24_spill] sm:$0xff] %v4151_v12  ;;  %v2786_v50 = vpack.c.bf16 %v1740_v36, %v1740_v36 }
 0x147   : > { %v1738_v2 = vadd.f32 %v4057_v51, %v1699_v32  ;;  %v1702_v3 = vadd.f32 %v3037_v23, %v1163_v22  ;;  %v1155_v10 = vadd.f32 %v1154_v41, %v4007_v42  ;;  %v3002_v35 = vpop.f32.mrf.mxu1  ;;  %v2191_v14 = vmul.f32 %v4721_v27, %v3869_v48  ;;  %v3041_v59 = vpop.f32.mrf.mxu0 }
 0x148   : > { %v2188_v49 = vmul.f32 %v4724_v20, %v3853_v46  ;;  %v2189_v13 = vmul.f32 %v4723_v5, %v3856_v16  ;;  %v4165_v23 = vadd.s32 248, %v3840_v33  ;;  %1901 = vst.msk [vmem:[%s4071_s20 + $0x28] sm:$0xf] %vm1890_vm0, %v2786_v50  ;;  %v1176_v22 = vadd.f32 %v3002_v35, %v4017_v40 }
 0x149   : > { %v2784_v42 = vpack.c.bf16 %v1738_v2, %v1738_v2  ;;  %v1741_v36 = vadd.f32 %v4057_v51, %v1702_v3  ;;  %v1700_v32 = vadd.f32 %v1599_v45, %v1155_v10  ;;  %v1167_v41 = vpop.f32.mrf.mxu1  ;;  %v2224_v27 = vsel %vm2220_vm4, %v2190_v11, 0.0  ;;  %v1615_v33 = vpop.f32.mrf.mxu0 }
 0x14a   : > { %v2221_v63 = vsel %vm2220_vm4, %v2188_v49, 0.0  ;;  %v2222_v5 = vsel %vm2220_vm4, %v2189_v13, 0.0  ;;  %v1168_v20 = vadd.f32 %v1167_v41, %v4023_v21  ;;  %v1705_v2 = vadd.f32 %v3040_v47, %v1176_v22 }
 0x14b   : > { %v2223_v48 = vadd.f32 %v2222_v5, %v2221_v63  ;;  %v4176_v50 = vld [vmem:[%s4071_s20 + $0x18] sm:$0xff]   ;;  %1899 = vst.msk [vmem:[%s4071_s20 + $0x20] sm:$0xf] %vm1890_vm0, %v2784_v42  ;;  %v2787_v45 = vpack.c.bf16 %v1741_v36, %v1741_v36  ;;  %v1739_v40 = vadd.f32 %v4057_v51, %v1700_v32  ;;  %v3003_v3 = vpop.f32.mrf.mxu1  ;;  %v3044_v49 = vpop.f32.mrf.mxu0  ;;  %v4191_v47 = vadd.s32 %v3844_v43, %v2019_v7 }
 0x14c   : > { %v4727_v11 = vunpack.c.l.bf16 %v4176_v50  ;;  %v4726_v10 = vunpack.c.h.bf16 %v4176_v50  ;;  %v1703_v35 = vadd.f32 %v1612_v8, %v1168_v20  ;;  %v1179_v21 = vadd.f32 %v3003_v3, %v4030_v44 }
 0x14d   : > { %v2225_v13 = vadd.f32 %v2224_v27, %v2223_v48  ;;  %v4185_v63 = vld [vmem:[%s4071_s20 + $0x10] sm:$0xff]   ;;  %1902 = vst.msk [vmem:[%s4071_s20 + $0x2c] sm:$0xf] %vm1890_vm0, %v2787_v45  ;;  %v2785_v5 = vpack.c.bf16 %v1739_v40, %v1739_v40  ;;  %v1744_v42 = vadd.f32 %v4057_v51, %v1705_v2  ;;  %v1170_v36 = vpop.f32.mrf.mxu1  ;;  %v2226_v32 = vsel %vm2220_vm4, %v2191_v14, 0.0  ;;  %v1628_v8 = vpop.f32.mrf.mxu0 }
 0x14e   : > { %v4728_v20 = vunpack.c.l.bf16 %v4185_v63  ;;  %v4737_v44 = vunpack.c.h.bf16 %v4185_v63  ;;  %v2194_v48 = vmul.f32 %v4727_v11, %v3887_v25  ;;  %v1742_v7 = vadd.f32 %v4057_v51, %v1703_v35 }
 0x14f   : > { %1900 = vst.msk [vmem:[%s4071_s20 + $0x24] sm:$0xf] %vm1890_vm0, %v2785_v5  ;;  %v2790_v27 = vpack.c.bf16 %v1744_v42, %v1744_v42  ;;  %v1706_v22 = vadd.f32 %v3041_v59, %v1179_v21  ;;  %v3006_v41 = vpop.f32.mrf.mxu1  ;;  %v2195_v14 = vmul.f32 %v4726_v10, %v3893_v60  ;;  %v2227_v2 = vadd.f32 %v2226_v32, %v2225_v13  ;;  %v3045_v3 = vpop.f32.mrf.mxu0 }
 0x150   : > { %v2192_v45 = vmul.f32 %v4728_v20, %v3875_v19  ;;  %v2193_v40 = vmul.f32 %v4737_v44, %v3881_v31  ;;  %v2788_v35 = vpack.c.bf16 %v1742_v7, %v1742_v7  ;;  %v1171_v21 = vadd.f32 %v1170_v36, %v4038_v39 }
 0x151   : > { %1905 = vst.msk [vmem:[%s4071_s20 + $0x38] sm:$0xf] %vm1890_vm0, %v2790_v27  ;;  %v1745_v59 = vadd.f32 %v4057_v51, %v1706_v22  ;;  %v1192_v5 = vadd.f32 %v3006_v41, %v3905_v55  ;;  %v1183_v42 = vpop.f32.mrf.mxu1  ;;  %v1631_v20 = vpop.f32.mrf.mxu0  ;;  %v4222_v13 = vsel %vm2083_vm6, 1.0, %v4806_v34  ;;  %v2177_v32 = vadd.f32 %v4151_v12, %v4140_v17 }
 0x152   : > { %v2228_v10 = vsel %vm2220_vm4, %v2192_v45, 0.0  ;;  %v1184_v11 = vadd.f32 %v1183_v42, %v3915_v56  ;;  %4810 = vst [vmem:[#allocation25_spill] sm:$0xff] %v4222_v13  ;;  %1903 = vst.msk [vmem:[%s4071_s20 + $0x30] sm:$0xf] %vm1890_vm0, %v2788_v35  ;;  %v1704_v55 = vadd.f32 %v1615_v33, %v1171_v21  ;;  %v2230_v56 = vsel %vm2220_vm4, %v2193_v40, 0.0 }
 0x153   : > { %v2229_v27 = vadd.f32 %v2228_v10, %v2227_v2  ;;  %v2791_v39 = vpack.c.bf16 %v1745_v59, %v1745_v59  ;;  %v1709_v36 = vadd.f32 %v3044_v49, %v1192_v5  ;;  %v3007_v7 = vpop.f32.mrf.mxu1  ;;  %v3048_v45 = vpop.f32.mrf.mxu0  ;;  %v4235_v17 = vadd.s32 %v3844_v43, %v4165_v23 }
 0x154   : > { %v4230_v22 = vld [vmem:[%s4071_s20 + $0x28] sm:$0xff]   ;;  %v1707_v41 = vadd.f32 %v1628_v8, %v1184_v11  ;;  %v1195_v62 = vadd.f32 %v3007_v7, %v3925_v53  ;;  %v2232_v10 = vsel %vm2220_vm4, %v2194_v48, 0.0  ;;  %v2234_v2 = vsel %vm2220_vm4, %v2195_v14, 0.0 }
 0x155   : > { %v2231_v35 = vadd.f32 %v2230_v56, %v2229_v27  ;;  %1906 = vst.msk [vmem:[%s4071_s20 + $0x3c] sm:$0xf] %vm1890_vm0, %v2791_v39  ;;  %v1743_v33 = vadd.f32 %v4057_v51, %v1704_v55  ;;  %v1186_v49 = vpop.f32.mrf.mxu1  ;;  %v1748_v11 = vadd.f32 %v4057_v51, %v1709_v36  ;;  %v1644_v23 = vpop.f32.mrf.mxu0  ;;  %v4730_v48 = vunpack.c.l.bf16 %v4230_v22 }
 0x156   : > { %v4243_v40 = vld [vmem:[%s4071_s20 + $0x20] sm:$0xff]   ;;  %v1746_v53 = vadd.f32 %v4057_v51, %v1707_v41  ;;  %v1710_v8 = vadd.f32 %v3045_v3, %v1195_v62  ;;  %v1187_v43 = vadd.f32 %v1186_v49, %v3935_v28  ;;  %v4729_v14 = vunpack.c.h.bf16 %v4230_v22 }
 0x157   : > { %v2233_v59 = vadd.f32 %v2232_v10, %v2231_v35  ;;  %v4736_v21 = vunpack.c.l.bf16 %v4243_v40  ;;  %v3010_v5 = vpop.f32.mrf.mxu1  ;;  %v4731_v42 = vunpack.c.h.bf16 %v4243_v40  ;;  %v2789_v27 = vpack.c.bf16 %v1743_v33, %v1743_v33  ;;  %v3049_v3 = vpop.f32.mrf.mxu0 }
 0x158   : > { %v2794_v39 = vpack.c.bf16 %v1748_v11, %v1748_v11  ;;  %v2792_v55 = vpack.c.bf16 %v1746_v53, %v1746_v53  ;;  %vm2084_vm7 = vcmp.lt.s32.totalorder %v4191_v47, 512  ;;  %v4257_v56 = vadd.f32 %v4222_v13, %v2177_v32 }
 0x159   : > { %v2196_v28 = vmul.f32 %v4736_v21, %v3901_v29  ;;  %v2235_v36 = vadd.f32 %v2234_v2, %v2233_v59  ;;  %v1199_v7 = vpop.f32.mrf.mxu1  ;;  %v2197_v41 = vmul.f32 %v4731_v42, %v3911_v6  ;;  %1904 = vst.msk [vmem:[%s4071_s20 + $0x34] sm:$0xf] %vm1890_vm0, %v2789_v27  ;;  %v1749_v62 = vadd.f32 %v4057_v51, %v1710_v8  ;;  %v1647_v35 = vpop.f32.mrf.mxu0  ;;  %v4819_v21 = vld [vmem:[#allocation17_spill] sm:$0xff] }
 0x15a   : > { %1909 = vst.msk [vmem:[%s4071_s20 + $0x48] sm:$0xf] %vm1890_vm0, %v2794_v39  ;;  %1907 = vst.msk [vmem:[%s4071_s20 + $0x40] sm:$0xf] %vm1890_vm0, %v2792_v55  ;;  %v1708_v10 = vadd.f32 %v1631_v20, %v1187_v43  ;;  %v1208_v2 = vadd.f32 %v3010_v5, %v3945_v52  ;;  %v2198_v32 = vmul.f32 %v4730_v48, %v3921_v4  ;;  %vm2085_vm8 = vcmp.lt.s32.totalorder %v4235_v17, 512 }
 0x15b   : > { %v2199_v33 = vmul.f32 %v4729_v14, %v3931_v15  ;;  %v2236_v49 = vsel %vm2220_vm4, %v2196_v28, 0.0  ;;  %v1200_v11 = vadd.f32 %v1199_v7, %v3955_v24  ;;  %v3011_v53 = vpop.f32.mrf.mxu1  ;;  %v2238_v20 = vsel %vm2220_vm4, %v2197_v41, 0.0  ;;  %v3052_v5 = vpop.f32.mrf.mxu0 }
 0x15c   : > { %v2237_v59 = vadd.f32 %v2236_v49, %v2235_v36  ;;  %v4280_v8 = vld [vmem:[%s4071_s20 + $0x38] sm:$0xff]   ;;  %v2795_v52 = vpack.c.bf16 %v1749_v62, %v1749_v62  ;;  %v1747_v43 = vadd.f32 %v4057_v51, %v1708_v10  ;;  %v1713_v55 = vadd.f32 %v3048_v45, %v1208_v2 }
 0x15d   : > { %v4733_v27 = vunpack.c.l.bf16 %v4280_v8  ;;  %v4732_v39 = vunpack.c.h.bf16 %v4280_v8  ;;  %v1711_v14 = vadd.f32 %v1644_v23, %v1200_v11  ;;  %v1202_v28 = vpop.f32.mrf.mxu1  ;;  %v1211_v36 = vadd.f32 %v3011_v53, %v3965_v37  ;;  %v1660_v41 = vpop.f32.mrf.mxu0 }
 0x15e   : > { %v2239_v48 = vadd.f32 %v2238_v20, %v2237_v59  ;;  %1910 = vst.msk [vmem:[%s4071_s20 + $0x4c] sm:$0xf] %vm1890_vm0, %v2795_v52  ;;  %v2793_v24 = vpack.c.bf16 %v1747_v43, %v1747_v43  ;;  %v1203_v7 = vadd.f32 %v1202_v28, %v3975_v18  ;;  %v2240_v62 = vsel %vm2220_vm4, %v2198_v32, 0.0 }
 0x15f   : > { %v1752_v10 = vadd.f32 %v4057_v51, %v1713_v55  ;;  %v1750_v49 = vadd.f32 %v4057_v51, %v1711_v14  ;;  %v3014_v42 = vpop.f32.mrf.mxu1  ;;  %v4295_v45 = vsel %vm2084_vm7, 1.0, %v4806_v34  ;;  %v1714_v37 = vadd.f32 %v3049_v3, %v1211_v36  ;;  %v3053_v32 = vpop.f32.mrf.mxu0  ;;  %v4812_v55 = vld [vmem:[#allocation10_spill] sm:$0xff]  ;;  %v4813_v36 = vld [vmem:[#allocation12_spill] sm:$0xff] }
 0x160   : > { %4811 = vst [vmem:[#allocation26_spill] sm:$0xff] %v4295_v45  ;;  %v2241_v23 = vadd.f32 %v2240_v62, %v2239_v48  ;;  %1908 = vst.msk [vmem:[%s4071_s20 + $0x44] sm:$0xf] %vm1890_vm0, %v2793_v24  ;;  %v1712_v2 = vadd.f32 %v1647_v35, %v1203_v7  ;;  %v1224_v18 = vadd.f32 %v3014_v42, %v3985_v54  ;;  %v2242_v11 = vsel %vm2220_vm4, %v2199_v33, 0.0  ;;  %v4305_v53 = vld [vmem:[%s4071_s20 + $0x30] sm:$0xff]  }
 0x161   : > { %v2202_v14 = vmul.f32 %v4733_v27, %v3961_v9  ;;  %v2798_v47 = vpack.c.bf16 %v1752_v10, %v1752_v10  ;;  %v2796_v59 = vpack.c.bf16 %v1750_v49, %v1750_v49  ;;  %v1215_v48 = vpop.f32.mrf.mxu1  ;;  %v2203_v3 = vmul.f32 %v4732_v39, %v3971_v0  ;;  %v1663_v33 = vpop.f32.mrf.mxu0  ;;  %v4814_v62 = vld [vmem:[#allocation14_spill] sm:$0xff] }
 0x162   : > { %v4735_v35 = vunpack.c.l.bf16 %v4305_v53  ;;  %v4734_v54 = vunpack.c.h.bf16 %v4305_v53  ;;  %v1753_v42 = vadd.f32 %v4057_v51, %v1714_v37  ;;  %v2243_v20 = vadd.f32 %v2242_v11, %v2241_v23  ;;  %v4815_v23 = vld [vmem:[#allocation5_spill] sm:$0xff] }
 0x163   : > { %1913 = vst.msk [vmem:[%s4071_s20 + $0x58] sm:$0xf] %vm1890_vm0, %v2798_v47  ;;  %1911 = vst.msk [vmem:[%s4071_s20 + $0x50] sm:$0xf] %vm1890_vm0, %v2796_v59  ;;  %v1751_v52 = vadd.f32 %v4057_v51, %v1712_v2  ;;  %v1717_v43 = vadd.f32 %v3052_v5, %v1224_v18  ;;  %v1216_v28 = vadd.f32 %v1215_v48, %v4812_v55  ;;  %v3015_v24 = vpop.f32.mrf.mxu1  ;;  %v3056_v2 = vpop.f32.mrf.mxu0  ;;  %v2248_v5 = vsel %vm2220_vm4, %v2202_v14, 0.0 }
 0x164   : > { %v2200_v7 = vmul.f32 %v4735_v35, %v4813_v36  ;;  %v2201_v10 = vmul.f32 %v4734_v54, %v4814_v62  ;;  %v2799_v49 = vpack.c.bf16 %v1753_v42, %v1753_v42  ;;  %v1227_v37 = vadd.f32 %v3015_v24, %v4815_v23 }
 0x165   : > { %v2797_v18 = vpack.c.bf16 %v1751_v52, %v1751_v52  ;;  %v1756_v11 = vadd.f32 %v4057_v51, %v1717_v43  ;;  %v1715_v47 = vadd.f32 %v1660_v41, %v1216_v28  ;;  %v1218_v59 = vpop.f32.mrf.mxu1  ;;  %v2250_v48 = vsel %vm2220_vm4, %v2203_v3, 0.0  ;;  %v4332_v27 = vld [vmem:[%s4071_s20 + $0x48] sm:$0xff]   ;;  %v4816_v52 = vld [vmem:[#allocation8_spill] sm:$0xff]  ;;  %v1676_v28 = vpop.f32.mrf.mxu0 }
 0x166   : > { %v2244_v55 = vsel %vm2220_vm4, %v2200_v7, 0.0  ;;  %v2246_v39 = vsel %vm2220_vm4, %v2201_v10, 0.0  ;;  %1914 = vst.msk [vmem:[%s4071_s20 + $0x5c] sm:$0xf] %vm1890_vm0, %v2799_v49  ;;  %v1718_v42 = vadd.f32 %v3053_v32, %v1227_v37  ;;  %v1219_v3 = vadd.f32 %v1218_v59, %v4816_v52  ;;  %v4817_v32 = vld [vmem:[#allocation16_spill] sm:$0xff]  ;;  %v4818_v59 = vld [vmem:[#allocation9_spill] sm:$0xff] }
 0x167   : > { %v2245_v24 = vadd.f32 %v2244_v55, %v2243_v20  ;;  %v4337_v23 = vld [vmem:[%s4071_s20 + $0x40] sm:$0xff]   ;;  %1912 = vst.msk [vmem:[%s4071_s20 + $0x54] sm:$0xf] %vm1890_vm0, %v2797_v18  ;;  %v2802_v14 = vpack.c.bf16 %v1756_v11, %v1756_v11  ;;  %v1754_v41 = vadd.f32 %v4057_v51, %v1715_v47  ;;  %v3018_v43 = vpop.f32.mrf.mxu1  ;;  %v4744_v55 = vunpack.c.l.bf16 %v4332_v27 }
 0x168   : > { %v4745_v7 = vunpack.c.l.bf16 %v4337_v23  ;;  %v4738_v10 = vunpack.c.h.bf16 %v4337_v23  ;;  %v1757_v49 = vadd.f32 %v4057_v51, %v1718_v42  ;;  %v1240_v20 = vadd.f32 %v3018_v43, %v4817_v32  ;;  %v3057_v43 = vpop.f32.mrf.mxu0 }
 0x169   : > { %v2247_v37 = vadd.f32 %v2246_v39, %v2245_v24  ;;  %1917 = vst.msk [vmem:[%s4071_s20 + $0x68] sm:$0xf] %vm1890_vm0, %v2802_v14  ;;  %v2800_v18 = vpack.c.bf16 %v1754_v41, %v1754_v41  ;;  %v1716_v11 = vadd.f32 %v1663_v33, %v1219_v3  ;;  %v1231_v47 = vpop.f32.mrf.mxu1  ;;  %v4743_v14 = vunpack.c.h.bf16 %v4332_v27  ;;  %v4820_v41 = vld [vmem:[#allocation7_spill] sm:$0xff] }
 0x16a   : > { %v2204_v52 = vmul.f32 %v4745_v7, %v4818_v59  ;;  %v2803_v54 = vpack.c.bf16 %v1757_v49, %v1757_v49  ;;  %v1721_v35 = vadd.f32 %v3056_v2, %v1240_v20  ;;  %v1232_v44 = vadd.f32 %v1231_v47, %v4819_v21 }
 0x16b   : > { %v2249_v42 = vadd.f32 %v2248_v5, %v2247_v37  ;;  %1915 = vst.msk [vmem:[%s4071_s20 + $0x60] sm:$0xf] %vm1890_vm0, %v2800_v18  ;;  %v1755_v39 = vadd.f32 %v4057_v51, %v1716_v11  ;;  %v3019_v24 = vpop.f32.mrf.mxu1  ;;  %v2205_v33 = vmul.f32 %v4738_v10, %v4820_v41  ;;  %v4821_v5 = vld [vmem:[#allocation19_spill] sm:$0xff]  ;;  %v4822_v18 = vld [vmem:[#allocation13_spill] sm:$0xff]  ;;  %v4823_v10 = vld [vmem:[#allocation20_spill] sm:$0xff] }
 0x16c   : > { %v2252_v3 = vsel %vm2220_vm4, %v2204_v52, 0.0  ;;  %1918 = vst.msk [vmem:[%s4071_s20 + $0x6c] sm:$0xf] %vm1890_vm0, %v2803_v54  ;;  %v1760_v21 = vadd.f32 %v4057_v51, %v1721_v35  ;;  %v1719_v2 = vadd.f32 %v1676_v28, %v1232_v44  ;;  %v1243_v49 = vadd.f32 %v3019_v24, %v4821_v5  ;;  %v4824_v24 = vld [vmem:[#allocation6_spill] sm:$0xff] }
 0x16d   : > { %v2251_v32 = vadd.f32 %v2250_v48, %v2249_v42  ;;  %v2801_v20 = vpack.c.bf16 %v1755_v39, %v1755_v39  ;;  %v1234_v37 = vpop.f32.mrf.mxu1  ;;  %v2206_v11 = vmul.f32 %v4744_v55, %v4822_v18  ;;  %v1679_v48 = vpop.f32.mrf.mxu0  ;;  %v4379_v39 = vld [vmem:[%s4071_s20 + $0x58] sm:$0xff]  }
 0x16e   : > { %v2806_v47 = vpack.c.bf16 %v1760_v21, %v1760_v21  ;;  %v1758_v52 = vadd.f32 %v4057_v51, %v1719_v2  ;;  %v1722_v54 = vadd.f32 %v3057_v43, %v1243_v49  ;;  %v1235_v35 = vadd.f32 %v1234_v37, %v4823_v10  ;;  %v4373_v44 = vld [vmem:[%s4071_s20 + $0x50] sm:$0xff]  }
 0x16f   : > { %v2253_v28 = vadd.f32 %v2252_v3, %v2251_v32  ;;  %1916 = vst.msk [vmem:[%s4071_s20 + $0x64] sm:$0xf] %vm1890_vm0, %v2801_v20  ;;  %v4741_v42 = vunpack.c.l.bf16 %v4373_v44  ;;  %v2207_v21 = vmul.f32 %v4743_v14, %v4824_v24  ;;  %v2254_v2 = vsel %vm2220_vm4, %v2205_v33, 0.0  ;;  %v4825_v20 = vld [vmem:[#allocation15_spill] sm:$0xff] }
 0x170   : > { %1921 = vst.msk [vmem:[%s4071_s20 + $0x78] sm:$0xf] %vm1890_vm0, %v2806_v47  ;;  %v2804_v10 = vpack.c.bf16 %v1758_v52, %v1758_v52  ;;  %v1761_v43 = vadd.f32 %v4057_v51, %v1722_v54  ;;  %v1720_v3 = vadd.f32 %v1679_v48, %v1235_v35  ;;  %v4740_v5 = vunpack.c.h.bf16 %v4373_v44  ;;  %v4826_v48 = vld [vmem:[#allocation18_spill] sm:$0xff] }
 0x171   : > { %v4392_v49 = vsel %vm2085_vm8, 1.0, %v4806_v34  ;;  %v2179_v32 = vadd.f32 %v4295_v45, %v4257_v56  ;;  %v2208_v33 = vmul.f32 %v4741_v42, %v4825_v20  ;;  %v2255_v37 = vadd.f32 %v2254_v2, %v2253_v28 }
 0x172   : > { %1919 = vst.msk [vmem:[%s4071_s20 + $0x70] sm:$0xf] %vm1890_vm0, %v2804_v10  ;;  %v2807_v47 = vpack.c.bf16 %v1761_v43, %v1761_v43  ;;  %v1759_v52 = vadd.f32 %v4057_v51, %v1720_v3  ;;  %v4739_v17 = vunpack.c.l.bf16 %v4379_v39  ;;  %v2256_v34 = vsel %vm2220_vm4, %v2206_v11, 0.0  ;;  %v4827_v3 = vld [vmem:[#allocation21_spill] sm:$0xff] }
 0x173   : > { %v4742_v54 = vunpack.c.h.bf16 %v4379_v39  ;;  %v2257_v56 = vadd.f32 %v2256_v34, %v2255_v37  ;;  %v2209_v28 = vmul.f32 %v4740_v5, %v4826_v48  ;;  %v2258_v2 = vsel %vm2220_vm4, %v2207_v21, 0.0 }
 0x174   : > { %1922 = vst.msk [vmem:[%s4071_s20 + $0x7c] sm:$0xf] %vm1890_vm0, %v2807_v47  ;;  %v2805_v35 = vpack.c.bf16 %v1759_v52, %v1759_v52  ;;  %v2260_v10 = vsel %vm2220_vm4, %v2208_v33, 0.0  ;;  %v2180_v51 = vadd.f32 %v4392_v49, %v2179_v32  ;;  %v2210_v37 = vmul.f32 %v4739_v17, %v4827_v3  ;;  %v4423_v52 = vld [vmem:[%s4071_s20 + $0x68] sm:$0xff]  }
 0x175   : > { %v2259_v43 = vadd.f32 %v2258_v2, %v2257_v56  ;;  %v4828_v33 = vld [vmem:[#allocation22_spill] sm:$0xff]  ;;  %v2262_v56 = vsel %vm2220_vm4, %v2209_v28, 0.0  ;;  %v4747_v5 = vunpack.c.l.bf16 %v4423_v52 }
 0x176   : > { %1920 = vst.msk [vmem:[%s4071_s20 + $0x74] sm:$0xf] %vm1890_vm0, %v2805_v35  ;;  %v4416_v11 = vld [vmem:[%s4071_s20 + $0x60] sm:$0xff]   ;;  %v2211_v32 = vmul.f32 %v4742_v54, %v4828_v33  ;;  %v2181_v35 = vrot.slane %v2180_v51, 4  ;;  %v2264_v42 = vsel %vm2220_vm4, %v2210_v37, 0.0 }
 0x177   : > { %v4746_v47 = vunpack.c.l.bf16 %v4416_v11  ;;  %v2261_v34 = vadd.f32 %v2260_v10, %v2259_v43  ;;  %v4748_v21 = vunpack.c.h.bf16 %v4416_v11  ;;  %v4749_v43 = vunpack.c.h.bf16 %v4423_v52 }
 0x178   : > { %v2266_v28 = vsel %vm2220_vm4, %v2211_v32, 0.0  ;;  %v2182_v7 = vadd.f32 %v2181_v35, %v2180_v51 }
 0x179   : > { %v2212_v2 = vmul.f32 %v4746_v47, %v4076_v38  ;;  %v2263_v17 = vadd.f32 %v2262_v56, %v2261_v34  ;;  %v2213_v54 = vmul.f32 %v4748_v21, %v4087_v57  ;;  %v2215_v32 = vmul.f32 %v4749_v43, %v4116_v58 }
 0x17b   : > { %v2265_v10 = vadd.f32 %v2264_v42, %v2263_v17  ;;  %v2268_v14 = vsel %vm2220_vm4, %v2212_v2, 0.0  ;;  %v2214_v42 = vmul.f32 %v4747_v5, %v4101_v30  ;;  %v4449_v17 = vld [vmem:[%s4071_s20 + $0x78] sm:$0xff]   ;;  %v2270_v35 = vsel %vm2220_vm4, %v2213_v54, 0.0 }
 0x17c   : > { %v2183_v2 = vrot.slane %v2182_v7, 2  ;;  %v2274_v43 = vsel %vm2220_vm4, %v2215_v32, 0.0 }
 0x17d   : > { %v4442_v55 = vld [vmem:[%s4071_s20 + $0x70] sm:$0xff]   ;;  %v2267_v47 = vadd.f32 %v2266_v28, %v2265_v10  ;;  %v4755_v28 = vunpack.c.l.bf16 %v4449_v17  ;;  %v2272_v5 = vsel %vm2220_vm4, %v2214_v42, 0.0 }
 0x17e   : > { %v4751_v34 = vunpack.c.l.bf16 %v4442_v55  ;;  %v4753_v56 = vunpack.c.h.bf16 %v4442_v55 }
 0x17f   : > { %v2269_v37 = vadd.f32 %v2268_v14, %v2267_v47  ;;  %v4757_v14 = vunpack.c.h.bf16 %v4449_v17  ;;  %v2218_v54 = vmul.f32 %v4755_v28, %v4295_v45 }
 0x180   : > { %v2216_v51 = vmul.f32 %v4751_v34, %v4151_v12  ;;  %v2217_v47 = vmul.f32 %v4753_v56, %v4222_v13  ;;  %v2184_v34 = vadd.f32 %v2183_v2, %v2182_v7 }
 0x181   : > { %v2271_v10 = vadd.f32 %v2270_v35, %v2269_v37  ;;  %v2280_v56 = vsel %vm2220_vm4, %v2218_v54, 0.0 }
 0x182   : > { %v2276_v58 = vsel %vm2220_vm4, %v2216_v51, 0.0  ;;  %v2278_v42 = vsel %vm2220_vm4, %v2217_v47, 0.0  ;;  %v2185_v35 = vrot.slane %v2184_v34, 1 }
 0x183   : > { %v2273_v21 = vadd.f32 %v2272_v5, %v2271_v10  ;;  %v2219_v5 = vmul.f32 %v4757_v14, %v4392_v49 }
 0x184   : > { %v2186_v7 = vadd.f32 %v2185_v35, %v2184_v34  ;;  %v4830_v34 = vunpack.c.h.bf16 %v4133_v61 }
 0x185   : > { %v2275_v12 = vadd.f32 %v2274_v43, %v2273_v21  ;;  %v2282_v51 = vsel %vm2220_vm4, %v2219_v5, 0.0  ;;  %v4831_v5 = vunpack.c.l.bf16 %v4124_v26 }
 0x186   : > { %v2187_v2 = vmax.f32 %v2186_v7, 1.0 }
 0x187   : > { %v2277_v37 = vadd.f32 %v2276_v58, %v2275_v12 }
 0x188   : > { %3131 = vrcp.f32 %v2187_v2 }
 0x189   : > { %v2279_v10 = vadd.f32 %v2278_v42, %v2277_v37 }
 0x18b   : > { %v2281_v32 = vadd.f32 %v2280_v56, %v2279_v10  ;;  %v4829_v56 = vunpack.c.l.bf16 %v4133_v61  ;;  %v4833_v10 = vunpack.c.l.bf16 %v4185_v63  ;;  %v4834_v61 = vunpack.c.h.bf16 %v4185_v63 }
 0x18d   : > { %v2283_v21 = vadd.f32 %v2282_v51, %v2281_v32 }
 0x18f   : > { %v2284_v43 = vrot.slane %v2283_v21, 4 }
 0x191   : > { %v2285_v13 = vadd.f32 %v2284_v43, %v2283_v21  ;;  %v4835_v21 = vld [vmem:[#allocation11_spill] sm:$0xff] }
 0x193   : > { %v2286_v28 = vrot.slane %v2285_v13, 2 }
 0x195   : > { %v2287_v58 = vadd.f32 %v2286_v28, %v2285_v13  ;;  %v3132_v14 = vpop.eup %3131  ;;  %v4832_v13 = vunpack.c.h.bf16 %v4124_v26  ;;  %v4836_v26 = vunpack.c.l.bf16 %v4176_v50 }
 0x197   : > { %v2288_v12 = vrot.slane %v2287_v58, 1 }
 0x199   : > { %v4476_v45 = vadd.f32 %v2288_v12, %v2287_v58 }
 0x19b   : > { %v4479_v47 = vmul.f32 %v3132_v14, %v4476_v45 }
 0x19d   : > { %v2292_v54 = vsub.f32 %v4829_v56, %v4479_v47  ;;  %v2293_v37 = vsub.f32 %v4830_v34, %v4479_v47  ;;  %v2294_v42 = vsub.f32 %v4831_v5, %v4479_v47  ;;  %v2295_v28 = vsub.f32 %v4832_v13, %v4479_v47 }
 0x19e   : > { %v2296_v32 = vsub.f32 %v4833_v10, %v4479_v47  ;;  %v2297_v7 = vsub.f32 %v4834_v61, %v4479_v47  ;;  %v4837_v56 = vunpack.c.h.bf16 %v4176_v50  ;;  %v4839_v50 = vunpack.c.h.bf16 %v4243_v40 }
 0x19f   : > { %v2324_v35 = vmul.f32 %v3853_v46, %v2292_v54  ;;  %v2325_v14 = vmul.f32 %v3856_v16, %v2293_v37  ;;  %v2326_v51 = vmul.f32 %v3863_v1, %v2294_v42  ;;  %v2327_v43 = vmul.f32 %v4835_v21, %v2295_v28 }
 0x1a0   : > { %v2298_v46 = vsub.f32 %v4836_v26, %v4479_v47  ;;  %v2328_v16 = vmul.f32 %v3875_v19, %v2296_v32  ;;  %v2299_v54 = vsub.f32 %v4837_v56, %v4479_v47  ;;  %v2329_v1 = vmul.f32 %v3881_v31, %v2297_v7 }
 0x1a1   : > { %v2356_v2 = vmul.f32 %v2324_v35, %v2324_v35  ;;  %v2357_v58 = vmul.f32 %v2325_v14, %v2325_v14  ;;  %v2358_v12 = vmul.f32 %v2326_v51, %v2326_v51  ;;  %v2359_v34 = vmul.f32 %v2327_v43, %v2327_v43 }
 0x1a2   : > { %v4838_v42 = vunpack.c.l.bf16 %v4243_v40  ;;  %v2330_v28 = vmul.f32 %v3887_v25, %v2298_v46  ;;  %v2360_v19 = vmul.f32 %v2328_v16, %v2328_v16  ;;  %v2301_v31 = vsub.f32 %v4839_v50, %v4479_v47 }
 0x1a3   : > { %v2388_v63 = vsel %vm2220_vm4, %v2356_v2, 0.0  ;;  %v2389_v37 = vsel %vm2220_vm4, %v2357_v58, 0.0  ;;  %v2391_v35 = vsel %vm2220_vm4, %v2358_v12, 0.0  ;;  %v2331_v10 = vmul.f32 %v3893_v60, %v2299_v54 }
 0x1a4   : > { %v2390_v5 = vadd.f32 %v2389_v37, %v2388_v63  ;;  %v2300_v13 = vsub.f32 %v4838_v42, %v4479_v47  ;;  %v2361_v32 = vmul.f32 %v2329_v1, %v2329_v1  ;;  %v2393_v51 = vsel %vm2220_vm4, %v2359_v34, 0.0 }
 0x1a5   : > { %v4840_v7 = vunpack.c.l.bf16 %v4230_v22  ;;  %v2362_v43 = vmul.f32 %v2330_v28, %v2330_v28  ;;  %v2395_v2 = vsel %vm2220_vm4, %v2360_v19, 0.0  ;;  %v4841_v40 = vunpack.c.h.bf16 %v4230_v22 }
 0x1a6   : > { %v2392_v14 = vadd.f32 %v2391_v35, %v2390_v5  ;;  %v2332_v25 = vmul.f32 %v3901_v29, %v2300_v13  ;;  %v2333_v60 = vmul.f32 %v3911_v6, %v2301_v31  ;;  %v2363_v46 = vmul.f32 %v2331_v10, %v2331_v10 }
 0x1a7   : > { %v2302_v21 = vsub.f32 %v4840_v7, %v4479_v47  ;;  %v2303_v26 = vsub.f32 %v4841_v40, %v4479_v47  ;;  %v2397_v16 = vsel %vm2220_vm4, %v2361_v32, 0.0  ;;  %v4842_v56 = vunpack.c.l.bf16 %v4305_v53 }
 0x1a8   : > { %v2394_v61 = vadd.f32 %v2393_v51, %v2392_v14  ;;  %v2364_v1 = vmul.f32 %v2332_v25, %v2332_v25  ;;  %v2399_v34 = vsel %vm2220_vm4, %v2362_v43, 0.0  ;;  %v4843_v22 = vunpack.c.h.bf16 %v4305_v53 }
 0x1a9   : > { %v2304_v54 = vsub.f32 %v4842_v56, %v4479_v47  ;;  %v2334_v29 = vmul.f32 %v3921_v4, %v2302_v21  ;;  %v2335_v6 = vmul.f32 %v3931_v15, %v2303_v26  ;;  %v2365_v5 = vmul.f32 %v2333_v60, %v2333_v60 }
 0x1aa   : > { %v2396_v58 = vadd.f32 %v2395_v2, %v2394_v61  ;;  %v2305_v37 = vsub.f32 %v4843_v22, %v4479_v47  ;;  %v2401_v42 = vsel %vm2220_vm4, %v2363_v46, 0.0  ;;  %v4844_v28 = vunpack.c.l.bf16 %v4280_v8 }
 0x1ab   : > { %v2336_v4 = vmul.f32 %v4813_v36, %v2304_v54  ;;  %v2366_v35 = vmul.f32 %v2334_v29, %v2334_v29  ;;  %v2403_v14 = vsel %vm2220_vm4, %v2364_v1, 0.0  ;;  %v4845_v53 = vunpack.c.h.bf16 %v4280_v8 }
 0x1ac   : > { %v2398_v12 = vadd.f32 %v2397_v16, %v2396_v58  ;;  %v2306_v19 = vsub.f32 %v4844_v28, %v4479_v47  ;;  %v2337_v15 = vmul.f32 %v4814_v62, %v2305_v37  ;;  %v2367_v10 = vmul.f32 %v2335_v6, %v2335_v6 }
 0x1ad   : > { %v2307_v31 = vsub.f32 %v4845_v53, %v4479_v47  ;;  %v2405_v32 = vsel %vm2220_vm4, %v2365_v5, 0.0  ;;  %v4846_v61 = vunpack.c.l.bf16 %v4337_v23  ;;  %v2368_v21 = vmul.f32 %v2336_v4, %v2336_v4 }
 0x1ae   : > { %v2400_v63 = vadd.f32 %v2399_v34, %v2398_v12  ;;  %v2338_v36 = vmul.f32 %v3961_v9, %v2306_v19  ;;  %v2407_v25 = vsel %vm2220_vm4, %v2366_v35, 0.0  ;;  %v4847_v8 = vunpack.c.h.bf16 %v4337_v23 }
 0x1af   : > { %v2308_v7 = vsub.f32 %v4846_v61, %v4479_v47  ;;  %v2339_v62 = vmul.f32 %v3971_v0, %v2307_v31  ;;  %v2369_v58 = vmul.f32 %v2337_v15, %v2337_v15  ;;  %v2409_v40 = vsel %vm2220_vm4, %v2367_v10, 0.0 }
 0x1b0   : > { %v2402_v13 = vadd.f32 %v2401_v42, %v2400_v63  ;;  %v2309_v2 = vsub.f32 %v4847_v8, %v4479_v47  ;;  %v4848_v60 = vunpack.c.l.bf16 %v4332_v27  ;;  %v2370_v16 = vmul.f32 %v2338_v36, %v2338_v36 }
 0x1b1   : > { %v2340_v9 = vmul.f32 %v4818_v59, %v2308_v7  ;;  %v2411_v12 = vsel %vm2220_vm4, %v2368_v21, 0.0  ;;  %v4849_v23 = vunpack.c.h.bf16 %v4332_v27  ;;  %v2371_v29 = vmul.f32 %v2339_v62, %v2339_v62 }
 0x1b2   : > { %v2404_v50 = vadd.f32 %v2403_v14, %v2402_v13  ;;  %v2310_v46 = vsub.f32 %v4848_v60, %v4479_v47  ;;  %v2341_v0 = vmul.f32 %v4820_v41, %v2309_v2  ;;  %v2413_v1 = vsel %vm2220_vm4, %v2369_v58, 0.0 }
 0x1b3   : > { %v2311_v54 = vsub.f32 %v4849_v23, %v4479_v47  ;;  %v4850_v63 = vunpack.c.l.bf16 %v4373_v44  ;;  %v2372_v37 = vmul.f32 %v2340_v9, %v2340_v9  ;;  %v2415_v6 = vsel %vm2220_vm4, %v2370_v16, 0.0 }
 0x1b4   : > { %v2406_v51 = vadd.f32 %v2405_v32, %v2404_v50  ;;  %v2342_v59 = vmul.f32 %v4822_v18, %v2310_v46  ;;  %v4851_v27 = vunpack.c.h.bf16 %v4373_v44  ;;  %v2373_v13 = vmul.f32 %v2341_v0, %v2341_v0 }
 0x1b5   : > { %v2312_v22 = vsub.f32 %v4850_v63, %v4479_v47  ;;  %v2343_v41 = vmul.f32 %v4824_v24, %v2311_v54  ;;  %v2417_v28 = vsel %vm2220_vm4, %v2371_v29, 0.0  ;;  %v4852_v4 = vunpack.c.l.bf16 %v4379_v39 }
 0x1b6   : > { %v2408_v43 = vadd.f32 %v2407_v25, %v2406_v51  ;;  %v2313_v42 = vsub.f32 %v4851_v27, %v4479_v47  ;;  %v2374_v14 = vmul.f32 %v2342_v59, %v2342_v59  ;;  %v2419_v50 = vsel %vm2220_vm4, %v2372_v37, 0.0 }
 0x1b7   : > { %v2314_v35 = vsub.f32 %v4852_v4, %v4479_v47  ;;  %v2344_v18 = vmul.f32 %v4825_v20, %v2312_v22  ;;  %v4853_v44 = vunpack.c.h.bf16 %v4379_v39  ;;  %v2375_v15 = vmul.f32 %v2343_v41, %v2343_v41 }
 0x1b8   : > { %v2410_v26 = vadd.f32 %v2409_v40, %v2408_v43  ;;  %v2345_v24 = vmul.f32 %v4826_v48, %v2313_v42  ;;  %v2421_v10 = vsel %vm2220_vm4, %v2373_v13, 0.0  ;;  %v4854_v51 = vunpack.c.l.bf16 %v4416_v11 }
 0x1b9   : > { %v2315_v31 = vsub.f32 %v4853_v44, %v4479_v47  ;;  %v2346_v20 = vmul.f32 %v4827_v3, %v2314_v35  ;;  %v2376_v7 = vmul.f32 %v2344_v18, %v2344_v18  ;;  %v2423_v36 = vsel %vm2220_vm4, %v2374_v14, 0.0  ;;  %v4865_v14 = vld [vmem:[#allocation26_spill] sm:$0xff] }
 0x1ba   : > { %v2412_v56 = vadd.f32 %v2411_v12, %v2410_v26  ;;  %v2316_v61 = vsub.f32 %v4854_v51, %v4479_v47  ;;  %v4855_v39 = vunpack.c.h.bf16 %v4416_v11  ;;  %v2377_v43 = vmul.f32 %v2345_v24, %v2345_v24 }
 0x1bb   : > { %v2347_v48 = vmul.f32 %v4828_v33, %v2315_v31  ;;  %v2425_v8 = vsel %vm2220_vm4, %v2375_v15, 0.0  ;;  %v4856_v62 = vunpack.c.l.bf16 %v4423_v52  ;;  %v2378_v40 = vmul.f32 %v2346_v20, %v2346_v20 }
 0x1bc   : > { %v2414_v34 = vadd.f32 %v2413_v1, %v2412_v56  ;;  %v2317_v25 = vsub.f32 %v4855_v39, %v4479_v47  ;;  %v2348_v3 = vmul.f32 %v4076_v38, %v2316_v61  ;;  %v2427_v26 = vsel %vm2220_vm4, %v2376_v7, 0.0 }
 0x1bd   : > { %v2318_v58 = vsub.f32 %v4856_v62, %v4479_v47  ;;  %v4857_v11 = vunpack.c.h.bf16 %v4423_v52  ;;  %v2379_v9 = vmul.f32 %v2347_v48, %v2347_v48  ;;  %v2429_v16 = vsel %vm2220_vm4, %v2377_v43, 0.0 }
 0x1be   : > { %v2416_v5 = vadd.f32 %v2415_v6, %v2414_v34  ;;  %v2349_v33 = vmul.f32 %v4087_v57, %v2317_v25  ;;  %v4858_v56 = vunpack.c.l.bf16 %v4442_v55  ;;  %v2380_v54 = vmul.f32 %v2348_v3, %v2348_v3  ;;  %v4860_v34 = vld [vmem:[#allocation23_spill] sm:$0xff] }
 0x1bf   : > { %v2319_v46 = vsub.f32 %v4857_v11, %v4479_v47  ;;  %v2350_v38 = vmul.f32 %v4101_v30, %v2318_v58  ;;  %v2431_v0 = vsel %vm2220_vm4, %v2378_v40, 0.0  ;;  %v4859_v52 = vunpack.c.h.bf16 %v4442_v55 }
 0x1c0   : > { %v2418_v19 = vadd.f32 %v2417_v28, %v2416_v5  ;;  %v2320_v23 = vsub.f32 %v4858_v56, %v4479_v47  ;;  %v2381_v63 = vmul.f32 %v2349_v33, %v2349_v33  ;;  %v2433_v22 = vsel %vm2220_vm4, %v2379_v9, 0.0  ;;  %v4862_v5 = vld [vmem:[#allocation24_spill] sm:$0xff]  ;;  %v4864_v28 = vld [vmem:[#allocation25_spill] sm:$0xff] }
 0x1c1   : > { %v2321_v1 = vsub.f32 %v4859_v52, %v4479_v47  ;;  %v2351_v57 = vmul.f32 %v4860_v34, %v2319_v46  ;;  %v4861_v37 = vunpack.c.l.bf16 %v4449_v17  ;;  %v2382_v27 = vmul.f32 %v2350_v38, %v2350_v38 }
 0x1c2   : > { %v2420_v53 = vadd.f32 %v2419_v50, %v2418_v19  ;;  %v2352_v30 = vmul.f32 %v4862_v5, %v2320_v23  ;;  %v2435_v42 = vsel %vm2220_vm4, %v2380_v54, 0.0  ;;  %v4863_v55 = vunpack.c.h.bf16 %v4449_v17 }
 0x1c3   : > { %v2322_v6 = vsub.f32 %v4861_v37, %v4479_v47  ;;  %v2353_v19 = vmul.f32 %v4864_v28, %v2321_v1  ;;  %v2383_v4 = vmul.f32 %v2351_v57, %v2351_v57  ;;  %v2437_v35 = vsel %vm2220_vm4, %v2381_v63, 0.0 }
 0x1c4   : > { %v2422_v32 = vadd.f32 %v2421_v10, %v2420_v53  ;;  %v2323_v13 = vsub.f32 %v4863_v55, %v4479_v47  ;;  %v2384_v53 = vmul.f32 %v2352_v30, %v2352_v30  ;;  %v2439_v44 = vsel %vm2220_vm4, %v2382_v27, 0.0 }
 0x1c5   : > { %v2354_v50 = vmul.f32 %v4865_v14, %v2322_v6  ;;  %v2385_v15 = vmul.f32 %v2353_v19, %v2353_v19  ;;  %v2441_v10 = vsel %vm2220_vm4, %v2383_v4, 0.0 }
 0x1c6   : > { %v2424_v21 = vadd.f32 %v2423_v36, %v2422_v32  ;;  %v2355_v24 = vmul.f32 %v4392_v49, %v2323_v13  ;;  %v2443_v47 = vsel %vm2220_vm4, %v2384_v53, 0.0 }
 0x1c7   : > { %v2386_v17 = vmul.f32 %v2354_v50, %v2354_v50  ;;  %v2445_v20 = vsel %vm2220_vm4, %v2385_v15, 0.0 }
 0x1c8   : > { %v2426_v2 = vadd.f32 %v2425_v8, %v2424_v21  ;;  %v2387_v61 = vmul.f32 %v2355_v24, %v2355_v24 }
 0x1c9   : > { %v2447_v36 = vsel %vm2220_vm4, %v2386_v17, 0.0 }
 0x1ca   : > { %v2428_v60 = vadd.f32 %v2427_v26, %v2426_v2  ;;  %v2449_v39 = vsel %vm2220_vm4, %v2387_v61, 0.0 }
 0x1cc   : > { %v2430_v12 = vadd.f32 %v2429_v16, %v2428_v60 }
 0x1ce   : > { %v2432_v29 = vadd.f32 %v2431_v0, %v2430_v12 }
 0x1d0   : > { %v2434_v59 = vadd.f32 %v2433_v22, %v2432_v29 }
 0x1d2   : > { %v2436_v41 = vadd.f32 %v2435_v42, %v2434_v59 }
 0x1d4   : > { %v2438_v18 = vadd.f32 %v2437_v35, %v2436_v41 }
 0x1d6   : > { %v2440_v31 = vadd.f32 %v2439_v44, %v2438_v18 }
 0x1d8   : > { %v2442_v32 = vadd.f32 %v2441_v10, %v2440_v31 }
 0x1da   : > { %v2444_v51 = vadd.f32 %v2443_v47, %v2442_v32 }
 0x1dc   : > { %v2446_v7 = vadd.f32 %v2445_v20, %v2444_v51 }
 0x1de   : > { %v2448_v21 = vadd.f32 %v2447_v36, %v2446_v7 }
 0x1e0   : > { %v2450_v49 = vadd.f32 %v2449_v39, %v2448_v21 }
 0x1e2   : > { %v2451_v25 = vrot.slane %v2450_v49, 4 }
 0x1e4   : > { %v2452_v48 = vadd.f32 %v2451_v25, %v2450_v49 }
 0x1e6   : > { %v2453_v43 = vrot.slane %v2452_v48, 2 }
 0x1e8   : > { %v2454_v8 = vadd.f32 %v2453_v43, %v2452_v48 }
 0x1ea   : > { %v2455_v2 = vrot.slane %v2454_v8, 1 }
 0x1ec   : > { %v2456_v62 = vadd.f32 %v2455_v2, %v2454_v8 }
 0x1ee   : > { %2458 = vrot.lane.b32.xlu0 %v2456_v62, %s3196_s22 }
 0x260   : > { %v2459_v58 = vpop.permute.xlu0 %2458 }
 0x261   : > { %v2461_v3 = vsel %vm2220_vm4, %v4476_v45, %v2459_v58 }
 0x262   : > { %2463 = vst.msk [vmem:[%s200_s27] sm:$0x1] %vm2462_vm9, %v2461_v3 }
 0x263   : > { %3146 = shalt.err (!%p3143_p4)
}
 0x264   : > { %s3147_s29 = scalar_lea.hbm %s4646_s6, 16  ;;  %s3151_s13 = scalar_lea.hbm %s4687_s4, 32 }
 0x265   : > { %p3148_p7 = scmp.ne.s32.totalorder %s4646_s6, %s3147_s29  ;;  %p3152_p10 = scmp.lt.s32.totalorder %s4646_s6, %s4687_s4 }
 0x266   : > { %p3153_p11 = scmp.lt.s32.totalorder %s3151_s13, %s3147_s29 }
 0x267   : > { %p3149_p8 = pnand %p3148_p7, %p3261_p5 }
 0x268   : > { %p3154_p12 = por %p3153_p11, %p3152_p10 }
 0x269   : > { %p3150_p9 = pneg %p3149_p8 }
 0x26b   : > { %p3155_p13 = pnand %p3154_p12, %p3150_p9 }
 0x26d   : > { %3158 = shalt.err (!%p3155_p13)
}
 0x26e   : > { %3065 = dma.vmem_to_hbm [thread:$0]  (%p3261_p5), %s2487_s28, 16, %s4646_s6, %s2470_s7  }
 0x26f PF: > { %p3071_p0 = scmp.ge.s32.totalorder %s3193_s18, 2  ;;  %s2506_s22 = sand.u32 1, %s3181_s15  }
 0x270   : > { %s2507_s23 = scalar_lea.sflag [#allocation3], %s2506_s22 }
 0x271   : > { %p3068_p1 = pnand %p3071_p0, %p3265_p6 }
 0x273   : > { %p3069_p2 = pneg %p3068_p1 }
 0x275   : > { %3176 = dma.done.wait (%p3069_p2), %s2507_s23, 16  }
 0x276   : > { %3178 = vsyncadd (%p3069_p2), %s2507_s23, 4294967280  ;;  %p15_p3 = scmp.ge.s32.totalorder %s3248_s21, 4   ;;  %s4866_s15 = smov %s3185_s16 }
 0x277   : > { %s4867_s16 = smov %s3189_s17  ;;  %s4868_s17 = smov %s3259_s24 }
 0x278   : > { %s4869_s18 = smov %s3248_s21  ;;  %17 = sbr.rel (!%p15_p3) target bundleno = 3 (0x3), region = 81 }
 0x27d   :  { %2511 = vsyncpa [#allocation3], 1 }
 0x27e   :  { %2513 = vsyncpa [#allocation3 + $0x1], 1 }

</bundles_post_ra>
